<compile_context>
chip_gen: v5e
topology: v5e:2x2
jax: 0.10.0
libtpu: 0.0.40
codegen_flags: <defaults>
</compile_context>

<pallas_src>
import functools

import jax
import jax.numpy as jnp
from jax.experimental import pallas as pl
from jax.experimental.pallas import tpu as pltpu

EPS = 0.003
_LANES = 128


def _round_up(x, m):
    return ((x + m - 1) // m) * m


# ----------------------------------------------------------------------------
# Pallas kernel: full DDPG forward (actor MLP -> action, critic MLP -> value)
# ----------------------------------------------------------------------------
def ddpg_kernel(
    state_ref,
    # fused / padded params (weights bf16, biases f32)
    w1f_ref, ab1_ref, cb1_ref,
    aw2_ref, ab2_ref,
    aw3p_ref, ab3p_ref,
    cw1ap_ref,
    cw2_ref, cb2_ref,
    cw3_ref, cb3_ref,
    cw4r_ref, cb4_ref,
    # output: packed (tile_b, 128) slab
    out_ref,
    *, action_dim,
):
    f32 = jnp.float32
    bf16 = jnp.bfloat16

    x16 = state_ref[...].astype(bf16)

    # Fused actor-fc1 / critic-fc1(state half): one K=S matmul with N=1024.
    h1f = jnp.dot(x16, w1f_ref[...], preferred_element_type=f32)

    # ----- Actor (PolicyNet) -----
    a1 = jnp.maximum(h1f[:, :512] + ab1_ref[...], 0.0)
    a2 = jnp.maximum(
        jnp.dot(a1.astype(bf16), aw2_ref[...], preferred_element_type=f32)
        + ab2_ref[...],
        0.0,
    )
    # fc3 columns zero-padded to 128 lanes => tanh(0)=0 in pad lanes.
    action_full = jnp.tanh(
        jnp.dot(a2.astype(bf16), aw3p_ref[...], preferred_element_type=f32)
        + ab3p_ref[...]
    )

    # ----- Critic (ValueNet) on cat(state, action) -----
    # cat(x, a) @ W1 == x @ W1[:S] + a @ W1[S:]; the padded action lanes hit
    # zero rows of cw1ap and contribute nothing.
    c1 = jnp.maximum(
        h1f[:, 512:]
        + jnp.dot(action_full.astype(bf16), cw1ap_ref[...],
                  preferred_element_type=f32)
        + cb1_ref[...],
        0.0,
    )
    c2 = jnp.maximum(
        jnp.dot(c1.astype(bf16), cw2_ref[...], preferred_element_type=f32)
        + cb2_ref[...],
        0.0,
    )
    c3 = jnp.maximum(
        jnp.dot(c2.astype(bf16), cw3_ref[...], preferred_element_type=f32)
        + cb3_ref[...],
        0.0,
    )

    # Final 256 -> 1 layer on the VPU/XLU (an N=1 matmul wastes a full MXU pass).
    value = jnp.sum(c3 * cw4r_ref[...], axis=-1, keepdims=True) + cb4_ref[...]

    # Lane-dense packed output: lanes [0, A) = action, lane A = value, rest 0.
    lane = jax.lax.broadcasted_iota(jnp.int32, action_full.shape, 1)
    out_ref[...] = jnp.where(
        lane == action_dim, jnp.broadcast_to(value, action_full.shape), action_full
    )


# ----------------------------------------------------------------------------
# Wrapper
# ----------------------------------------------------------------------------
_WEIGHT_NAMES = (
    "w1f", "ab1", "cb1",
    "aw2", "ab2",
    "aw3p", "ab3p",
    "cw1ap",
    "cw2", "cb2",
    "cw3", "cb3",
    "cw4r", "cb4",
)


def ddpg_forward(state, kparams, action_dim):
    batch, state_dim = state.shape
    assert action_dim + 1 <= _LANES, "packed output assumes action_dim < 128"

    # Pad batch to a multiple of 8 sublanes; tile at most 256 rows per grid step.
    padded_b = _round_up(max(batch, 8), 8)
    tile_b = min(256, padded_b)
    padded_b = _round_up(padded_b, tile_b)
    if padded_b != batch:
        state = jnp.pad(state, ((0, padded_b - batch), (0, 0)))

    weights = [kparams[n] for n in _WEIGHT_NAMES]

    grid = (padded_b // tile_b,)
    in_specs = [pl.BlockSpec((tile_b, state_dim), lambda i: (i, 0))]
    # Weights: constant block index -> stay resident in VMEM across grid steps.
    for w in weights:
        in_specs.append(pl.BlockSpec(w.shape, lambda i: (0, 0)))
    out_spec = pl.BlockSpec((tile_b, _LANES), lambda i: (i, 0))

    packed = pl.pallas_call(
        functools.partial(ddpg_kernel, action_dim=action_dim),
        out_shape=jax.ShapeDtypeStruct((padded_b, _LANES), jnp.float32),
        grid_spec=pltpu.PrefetchScalarGridSpec(
            num_scalar_prefetch=0,
            grid=grid,
            in_specs=in_specs,
            out_specs=out_spec,
        ),
        compiler_params=pltpu.CompilerParams(
            dimension_semantics=("parallel",),   # shards batch across v7x's 2 TCs
            vmem_limit_bytes=16 << 20,
        ),
    )(state, *weights)

    action = packed[:batch, :action_dim]
    value = packed[:batch, action_dim:action_dim + 1]
    return action, value


# ----------------------------------------------------------------------------
# Deterministic parameter init (mirrors norm_col_init / nn.Linear defaults)
# ----------------------------------------------------------------------------
def norm_col_init(key, in_dim, out_dim, std=1.0):
    # Weight stored transposed vs PyTorch, i.e. (in_dim, out_dim); normalize
    # each output unit's incoming weights (axis 0).
    w = jax.random.normal(key, (in_dim, out_dim), dtype=jnp.float32)
    return w * std / jnp.sqrt(jnp.sum(w * w, axis=0, keepdims=True))


def bias_init(key, fan_in, out_dim):
    bound = 1.0 / float(fan_in) ** 0.5
    return jax.random.uniform(
        key, (1, out_dim), jnp.float32, minval=-bound, maxval=bound
    )


def make_params(key, state_dim, action_dim):
    """Logical f32 params in (in_dim, out_dim) layout."""
    ks = jax.random.split(key, 14)
    p = {}
    # Actor
    p["aw1"] = norm_col_init(ks[0], state_dim, 512)
    p["ab1"] = bias_init(ks[1], state_dim, 512)
    p["aw2"] = norm_col_init(ks[2], 512, 256)
    p["ab2"] = bias_init(ks[3], 512, 256)
    p["aw3"] = norm_col_init(ks[4], 256, action_dim)
    p["ab3"] = bias_init(ks[5], 256, action_dim)
    # Critic (fc1 over concatenated [state, action])
    p["cw1"] = norm_col_init(ks[6], state_dim + action_dim, 512)
    p["cb1"] = bias_init(ks[7], state_dim + action_dim, 512)
    p["cw2"] = norm_col_init(ks[8], 512, 512)
    p["cb2"] = bias_init(ks[9], 512, 512)
    p["cw3"] = norm_col_init(ks[10], 512, 256)
    p["cb3"] = bias_init(ks[11], 512, 256)
    p["cw4"] = jax.random.uniform(
        ks[12], (256, 1), jnp.float32, minval=-EPS, maxval=EPS
    )
    p["cb4"] = bias_init(ks[13], 256, 1)
    return p


def prep_kernel_params(p, state_dim, action_dim):
    """Fuse / pad / quantize logical params into the kernel layout."""
    bf16 = jnp.bfloat16
    cw1s = p["cw1"][:state_dim, :]
    cw1a = p["cw1"][state_dim:, :]
    kp = {}
    # Fuse the two matmuls that share x: [aw1 | cw1s] -> (S, 1024).
    kp["w1f"] = jnp.concatenate([p["aw1"], cw1s], axis=1).astype(bf16)
    kp["ab1"] = p["ab1"]
    kp["cb1"] = p["cb1"]
    kp["aw2"] = p["aw2"].astype(bf16)
    kp["ab2"] = p["ab2"]
    # Pad actor fc3 to 128 output lanes (zeros -> tanh(0)=0 in pad lanes).
    kp["aw3p"] = jnp.pad(p["aw3"], ((0, 0), (0, _LANES - action_dim))).astype(bf16)
    kp["ab3p"] = jnp.pad(p["ab3"], ((0, 0), (0, _LANES - action_dim)))
    # Pad critic fc1 action-half rows to 128 (zero rows for padded action lanes).
    kp["cw1ap"] = jnp.pad(cw1a, ((0, _LANES - action_dim), (0, 0))).astype(bf16)
    kp["cw2"] = p["cw2"].astype(bf16)
    kp["cb2"] = p["cb2"]
    kp["cw3"] = p["cw3"].astype(bf16)
    kp["cb3"] = p["cb3"]
    # Final 256->1 layer kept f32 (tiny), stored as a (1, 256) row for the VPU.
    kp["cw4r"] = p["cw4"].T
    kp["cb4"] = p["cb4"]
    return kp


# ----------------------------------------------------------------------------
# Pure-JAX reference for correctness (same bf16 weight quantization as kernel)
# ----------------------------------------------------------------------------
def ddpg_ref(state, p):
    def q(w):  # match the kernel's bf16 weight storage
        return w.astype(jnp.bfloat16).astype(jnp.float32)

    h = jax.nn.relu(state @ q(p["aw1"]) + p["ab1"])
    h = jax.nn.relu(h @ q(p["aw2"]) + p["ab2"])
    action = jnp.tanh(h @ q(p["aw3"]) + p["ab3"])
    xa = jnp.concatenate([state, action], axis=-1)
    h = jax.nn.relu(xa @ q(p["cw1"]) + p["cb1"])
    h = jax.nn.relu(h @ q(p["cw2"]) + p["cb2"])
    h = jax.nn.relu(h @ q(p["cw3"]) + p["cb3"])
    value = h @ p["cw4"] + p["cb4"]
    return action, value


if __name__ == "__main__":
    # Small shapes consistent with the module: obs_shape[0]=16, stack_frames=2
    # -> state_dim = 32 ; action_dim = 8 ; batch = 2.
    batch, state_dim, action_dim = 2, 32, 8

    key = jax.random.PRNGKey(0)
    pkey, skey = jax.random.split(key)
    params = make_params(pkey, state_dim, action_dim)
    kparams = prep_kernel_params(params, state_dim, action_dim)
    state = jax.random.normal(skey, (batch, state_dim), dtype=jnp.float32)

    action, value = ddpg_forward(state, kparams, action_dim)
    jax.block_until_ready((action, value))

    ref_action, ref_value = ddpg_ref(state, params)
    assert action.shape == (batch, action_dim)
    assert value.shape == (batch, 1)
    assert jnp.allclose(action, ref_action, atol=2e-2, rtol=2e-2)
    assert jnp.allclose(value, ref_value, atol=2e-2, rtol=2e-2)

    print("KERNEL_OK")
</pallas_src>

<mosaic_0001>
module attributes {stable_mosaic.version = 11 : i64} {
  func.func @ddpg_kernel(%arg0: i32, %arg1: memref<8x32xf32, #tpu.memory_space<vmem>>, %arg2: memref<32x1024xbf16, #tpu.memory_space<vmem>>, %arg3: memref<1x512xf32, #tpu.memory_space<vmem>>, %arg4: memref<1x512xf32, #tpu.memory_space<vmem>>, %arg5: memref<512x256xbf16, #tpu.memory_space<vmem>>, %arg6: memref<1x256xf32, #tpu.memory_space<vmem>>, %arg7: memref<256x128xbf16, #tpu.memory_space<vmem>>, %arg8: memref<1x128xf32, #tpu.memory_space<vmem>>, %arg9: memref<128x512xbf16, #tpu.memory_space<vmem>>, %arg10: memref<512x512xbf16, #tpu.memory_space<vmem>>, %arg11: memref<1x512xf32, #tpu.memory_space<vmem>>, %arg12: memref<512x256xbf16, #tpu.memory_space<vmem>>, %arg13: memref<1x256xf32, #tpu.memory_space<vmem>>, %arg14: memref<1x256xf32, #tpu.memory_space<vmem>>, %arg15: memref<1x1xf32, #tpu.memory_space<vmem>>, %arg16: memref<8x128xf32, #tpu.memory_space<vmem>>) attributes {dimension_semantics = [#tpu.dimension_semantics<parallel>], iteration_bounds = array<i64: 1>, scalar_prefetch = 0 : i64, scratch_operands = 0 : i64, tpu.core_type = #tpu.core_type<tc>, window_params = [{transform_indices = @transform_0, window_bounds = array<i64: 8, 32>}, {pipeline_mode = #tpu.pipeline_mode<synchronous>, transform_indices = @transform_1, window_bounds = array<i64: 32, 1024>}, {pipeline_mode = #tpu.pipeline_mode<synchronous>, transform_indices = @transform_2, window_bounds = array<i64: 1, 512>}, {pipeline_mode = #tpu.pipeline_mode<synchronous>, transform_indices = @transform_3, window_bounds = array<i64: 1, 512>}, {pipeline_mode = #tpu.pipeline_mode<synchronous>, transform_indices = @transform_4, window_bounds = array<i64: 512, 256>}, {pipeline_mode = #tpu.pipeline_mode<synchronous>, transform_indices = @transform_5, window_bounds = array<i64: 1, 256>}, {pipeline_mode = #tpu.pipeline_mode<synchronous>, transform_indices = @transform_6, window_bounds = array<i64: 256, 128>}, {pipeline_mode = #tpu.pipeline_mode<synchronous>, transform_indices = @transform_7, window_bounds = array<i64: 1, 128>}, {pipeline_mode = #tpu.pipeline_mode<synchronous>, transform_indices = @transform_8, window_bounds = array<i64: 128, 512>}, {pipeline_mode = #tpu.pipeline_mode<synchronous>, transform_indices = @transform_9, window_bounds = array<i64: 512, 512>}, {pipeline_mode = #tpu.pipeline_mode<synchronous>, transform_indices = @transform_10, window_bounds = array<i64: 1, 512>}, {pipeline_mode = #tpu.pipeline_mode<synchronous>, transform_indices = @transform_11, window_bounds = array<i64: 512, 256>}, {pipeline_mode = #tpu.pipeline_mode<synchronous>, transform_indices = @transform_12, window_bounds = array<i64: 1, 256>}, {pipeline_mode = #tpu.pipeline_mode<synchronous>, transform_indices = @transform_13, window_bounds = array<i64: 1, 256>}, {pipeline_mode = #tpu.pipeline_mode<synchronous>, transform_indices = @transform_14, window_bounds = array<i64: 1, 1>}, {transform_indices = @transform_15, window_bounds = array<i64: 8, 128>}]} {
    %c0 = arith.constant 0 : index
    %c0_0 = arith.constant 0 : index
    %0 = vector.load %arg1[%c0, %c0_0] : memref<8x32xf32, #tpu.memory_space<vmem>>, vector<8x32xf32>
    %1 = arith.truncf %0 : vector<8x32xf32> to vector<8x32xbf16>
    %c0_1 = arith.constant 0 : index
    %c0_2 = arith.constant 0 : index
    %2 = vector.load %arg2[%c0_1, %c0_2] : memref<32x1024xbf16, #tpu.memory_space<vmem>>, vector<32x1024xbf16>
    %cst = arith.constant dense<0.000000e+00> : vector<8x1024xf32>
    %3 = tpu.matmul %1, %2, %cst {dimension_numbers = #tpu.dot_dimension_numbers<[1], [0], [0], [1], [0, 0, 1, 1], [], []>} : vector<8x32xbf16>, vector<32x1024xbf16>, vector<8x1024xf32> -> vector<8x1024xf32>
    %4 = vector.extract_strided_slice %3 {offsets = [0, 0], sizes = [8, 512], strides = [1, 1]} : vector<8x1024xf32> to vector<8x512xf32>
    %c0_3 = arith.constant 0 : index
    %c0_4 = arith.constant 0 : index
    %5 = vector.load %arg3[%c0_3, %c0_4] : memref<1x512xf32, #tpu.memory_space<vmem>>, vector<1x512xf32>
    %6 = vector.broadcast %5 : vector<1x512xf32> to vector<8x512xf32>
    %7 = arith.addf %4, %6 : vector<8x512xf32>
    %cst_5 = arith.constant 0.000000e+00 : f32
    %8 = vector.broadcast %cst_5 : f32 to vector<8x512xf32>
    %9 = arith.maximumf %7, %8 : vector<8x512xf32>
    %10 = arith.truncf %9 : vector<8x512xf32> to vector<8x512xbf16>
    %c0_6 = arith.constant 0 : index
    %c0_7 = arith.constant 0 : index
    %11 = vector.load %arg5[%c0_6, %c0_7] : memref<512x256xbf16, #tpu.memory_space<vmem>>, vector<512x256xbf16>
    %cst_8 = arith.constant dense<0.000000e+00> : vector<8x256xf32>
    %12 = tpu.matmul %10, %11, %cst_8 {dimension_numbers = #tpu.dot_dimension_numbers<[1], [0], [0], [1], [0, 0, 1, 1], [], []>} : vector<8x512xbf16>, vector<512x256xbf16>, vector<8x256xf32> -> vector<8x256xf32>
    %c0_9 = arith.constant 0 : index
    %c0_10 = arith.constant 0 : index
    %13 = vector.load %arg6[%c0_9, %c0_10] : memref<1x256xf32, #tpu.memory_space<vmem>>, vector<1x256xf32>
    %14 = vector.broadcast %13 : vector<1x256xf32> to vector<8x256xf32>
    %15 = arith.addf %12, %14 : vector<8x256xf32>
    %cst_11 = arith.constant 0.000000e+00 : f32
    %16 = vector.broadcast %cst_11 : f32 to vector<8x256xf32>
    %17 = arith.maximumf %15, %16 : vector<8x256xf32>
    %18 = arith.truncf %17 : vector<8x256xf32> to vector<8x256xbf16>
    %c0_12 = arith.constant 0 : index
    %c0_13 = arith.constant 0 : index
    %19 = vector.load %arg7[%c0_12, %c0_13] : memref<256x128xbf16, #tpu.memory_space<vmem>>, vector<256x128xbf16>
    %cst_14 = arith.constant dense<0.000000e+00> : vector<8x128xf32>
    %20 = tpu.matmul %18, %19, %cst_14 {dimension_numbers = #tpu.dot_dimension_numbers<[1], [0], [0], [1], [0, 0, 1, 1], [], []>} : vector<8x256xbf16>, vector<256x128xbf16>, vector<8x128xf32> -> vector<8x128xf32>
    %c0_15 = arith.constant 0 : index
    %c0_16 = arith.constant 0 : index
    %21 = vector.load %arg8[%c0_15, %c0_16] : memref<1x128xf32, #tpu.memory_space<vmem>>, vector<1x128xf32>
    %22 = vector.broadcast %21 : vector<1x128xf32> to vector<8x128xf32>
    %23 = arith.addf %20, %22 : vector<8x128xf32>
    %24 = math.tanh %23 : vector<8x128xf32>
    %25 = vector.extract_strided_slice %3 {offsets = [0, 512], sizes = [8, 512], strides = [1, 1]} : vector<8x1024xf32> to vector<8x512xf32>
    %26 = arith.truncf %24 : vector<8x128xf32> to vector<8x128xbf16>
    %c0_17 = arith.constant 0 : index
    %c0_18 = arith.constant 0 : index
    %27 = vector.load %arg9[%c0_17, %c0_18] : memref<128x512xbf16, #tpu.memory_space<vmem>>, vector<128x512xbf16>
    %cst_19 = arith.constant dense<0.000000e+00> : vector<8x512xf32>
    %28 = tpu.matmul %26, %27, %cst_19 {dimension_numbers = #tpu.dot_dimension_numbers<[1], [0], [0], [1], [0, 0, 1, 1], [], []>} : vector<8x128xbf16>, vector<128x512xbf16>, vector<8x512xf32> -> vector<8x512xf32>
    %29 = arith.addf %25, %28 : vector<8x512xf32>
    %c0_20 = arith.constant 0 : index
    %c0_21 = arith.constant 0 : index
    %30 = vector.load %arg4[%c0_20, %c0_21] : memref<1x512xf32, #tpu.memory_space<vmem>>, vector<1x512xf32>
    %31 = vector.broadcast %30 : vector<1x512xf32> to vector<8x512xf32>
    %32 = arith.addf %29, %31 : vector<8x512xf32>
    %cst_22 = arith.constant 0.000000e+00 : f32
    %33 = vector.broadcast %cst_22 : f32 to vector<8x512xf32>
    %34 = arith.maximumf %32, %33 : vector<8x512xf32>
    %35 = arith.truncf %34 : vector<8x512xf32> to vector<8x512xbf16>
    %c0_23 = arith.constant 0 : index
    %c0_24 = arith.constant 0 : index
    %36 = vector.load %arg10[%c0_23, %c0_24] : memref<512x512xbf16, #tpu.memory_space<vmem>>, vector<512x512xbf16>
    %cst_25 = arith.constant dense<0.000000e+00> : vector<8x512xf32>
    %37 = tpu.matmul %35, %36, %cst_25 {dimension_numbers = #tpu.dot_dimension_numbers<[1], [0], [0], [1], [0, 0, 1, 1], [], []>} : vector<8x512xbf16>, vector<512x512xbf16>, vector<8x512xf32> -> vector<8x512xf32>
    %c0_26 = arith.constant 0 : index
    %c0_27 = arith.constant 0 : index
    %38 = vector.load %arg11[%c0_26, %c0_27] : memref<1x512xf32, #tpu.memory_space<vmem>>, vector<1x512xf32>
    %39 = vector.broadcast %38 : vector<1x512xf32> to vector<8x512xf32>
    %40 = arith.addf %37, %39 : vector<8x512xf32>
    %cst_28 = arith.constant 0.000000e+00 : f32
    %41 = vector.broadcast %cst_28 : f32 to vector<8x512xf32>
    %42 = arith.maximumf %40, %41 : vector<8x512xf32>
    %43 = arith.truncf %42 : vector<8x512xf32> to vector<8x512xbf16>
    %c0_29 = arith.constant 0 : index
    %c0_30 = arith.constant 0 : index
    %44 = vector.load %arg12[%c0_29, %c0_30] : memref<512x256xbf16, #tpu.memory_space<vmem>>, vector<512x256xbf16>
    %cst_31 = arith.constant dense<0.000000e+00> : vector<8x256xf32>
    %45 = tpu.matmul %43, %44, %cst_31 {dimension_numbers = #tpu.dot_dimension_numbers<[1], [0], [0], [1], [0, 0, 1, 1], [], []>} : vector<8x512xbf16>, vector<512x256xbf16>, vector<8x256xf32> -> vector<8x256xf32>
    %c0_32 = arith.constant 0 : index
    %c0_33 = arith.constant 0 : index
    %46 = vector.load %arg13[%c0_32, %c0_33] : memref<1x256xf32, #tpu.memory_space<vmem>>, vector<1x256xf32>
    %47 = vector.broadcast %46 : vector<1x256xf32> to vector<8x256xf32>
    %48 = arith.addf %45, %47 : vector<8x256xf32>
    %cst_34 = arith.constant 0.000000e+00 : f32
    %49 = vector.broadcast %cst_34 : f32 to vector<8x256xf32>
    %50 = arith.maximumf %48, %49 : vector<8x256xf32>
    %c0_35 = arith.constant 0 : index
    %c0_36 = arith.constant 0 : index
    %51 = vector.load %arg14[%c0_35, %c0_36] : memref<1x256xf32, #tpu.memory_space<vmem>>, vector<1x256xf32>
    %52 = vector.broadcast %51 : vector<1x256xf32> to vector<8x256xf32>
    %53 = arith.mulf %50, %52 : vector<8x256xf32>
    %cst_37 = arith.constant dense<0.000000e+00> : vector<8xf32>
    %54 = vector.multi_reduction <add>, %53, %cst_37 [1] : vector<8x256xf32> to vector<8xf32>
    %55 = vector.shape_cast %54 : vector<8xf32> to vector<8x1xf32>
    %c0_38 = arith.constant 0 : index
    %c0_39 = arith.constant 0 : index
    %56 = vector.load %arg15[%c0_38, %c0_39] : memref<1x1xf32, #tpu.memory_space<vmem>>, vector<1x1xf32>
    %57 = vector.broadcast %56 : vector<1x1xf32> to vector<8x1xf32>
    %58 = arith.addf %55, %57 : vector<8x1xf32>
    %59 = tpu.iota {dimensions = array<i32: 1>} : vector<8x128xi32>
    %c8_i32 = arith.constant 8 : i32
    %60 = vector.broadcast %c8_i32 : i32 to vector<8x128xi32>
    %61 = arith.cmpi eq, %59, %60 : vector<8x128xi32>
    %62 = vector.shape_cast %58 : vector<8x1xf32> to vector<8x1xf32>
    %63 = vector.broadcast %62 : vector<8x1xf32> to vector<8x128xf32>
    %64 = arith.select %61, %63, %24 : vector<8x128xi1>, vector<8x128xf32>
    %c0_40 = arith.constant 0 : index
    %c0_41 = arith.constant 0 : index
    %65 = vector.load %arg16[%c0_40, %c0_41] : memref<8x128xf32, #tpu.memory_space<vmem>>, vector<8x128xf32>
    tpu.vector_store %arg16[%c0_40, %c0_41], %64 {strides = array<i32>} : memref<8x128xf32, #tpu.memory_space<vmem>>, vector<8x128xf32>,
    return
  }
  func.func @transform_0(%arg0: i32) -> (i32, i32) {
    %c0_i32 = arith.constant 0 : i32
    %c0_i32_0 = arith.constant 0 : i32
    return %arg0, %c0_i32 : i32, i32
  }
  func.func @transform_1(%arg0: i32) -> (i32, i32) {
    %c0_i32 = arith.constant 0 : i32
    %c0_i32_0 = arith.constant 0 : i32
    %c0_i32_1 = arith.constant 0 : i32
    return %c0_i32, %c0_i32_0 : i32, i32
  }
  func.func @transform_2(%arg0: i32) -> (i32, i32) {
    %c0_i32 = arith.constant 0 : i32
    %c0_i32_0 = arith.constant 0 : i32
    %c0_i32_1 = arith.constant 0 : i32
    return %c0_i32, %c0_i32_0 : i32, i32
  }
  func.func @transform_3(%arg0: i32) -> (i32, i32) {
    %c0_i32 = arith.constant 0 : i32
    %c0_i32_0 = arith.constant 0 : i32
    %c0_i32_1 = arith.constant 0 : i32
    return %c0_i32, %c0_i32_0 : i32, i32
  }
  func.func @transform_4(%arg0: i32) -> (i32, i32) {
    %c0_i32 = arith.constant 0 : i32
    %c0_i32_0 = arith.constant 0 : i32
    %c0_i32_1 = arith.constant 0 : i32
    return %c0_i32, %c0_i32_0 : i32, i32
  }
  func.func @transform_5(%arg0: i32) -> (i32, i32) {
    %c0_i32 = arith.constant 0 : i32
    %c0_i32_0 = arith.constant 0 : i32
    %c0_i32_1 = arith.constant 0 : i32
    return %c0_i32, %c0_i32_0 : i32, i32
  }
  func.func @transform_6(%arg0: i32) -> (i32, i32) {
    %c0_i32 = arith.constant 0 : i32
    %c0_i32_0 = arith.constant 0 : i32
    %c0_i32_1 = arith.constant 0 : i32
    return %c0_i32, %c0_i32_0 : i32, i32
  }
  func.func @transform_7(%arg0: i32) -> (i32, i32) {
    %c0_i32 = arith.constant 0 : i32
    %c0_i32_0 = arith.constant 0 : i32
    %c0_i32_1 = arith.constant 0 : i32
    return %c0_i32, %c0_i32_0 : i32, i32
  }
  func.func @transform_8(%arg0: i32) -> (i32, i32) {
    %c0_i32 = arith.constant 0 : i32
    %c0_i32_0 = arith.constant 0 : i32
    %c0_i32_1 = arith.constant 0 : i32
    return %c0_i32, %c0_i32_0 : i32, i32
  }
  func.func @transform_9(%arg0: i32) -> (i32, i32) {
    %c0_i32 = arith.constant 0 : i32
    %c0_i32_0 = arith.constant 0 : i32
    %c0_i32_1 = arith.constant 0 : i32
    return %c0_i32, %c0_i32_0 : i32, i32
  }
  func.func @transform_10(%arg0: i32) -> (i32, i32) {
    %c0_i32 = arith.constant 0 : i32
    %c0_i32_0 = arith.constant 0 : i32
    %c0_i32_1 = arith.constant 0 : i32
    return %c0_i32, %c0_i32_0 : i32, i32
  }
  func.func @transform_11(%arg0: i32) -> (i32, i32) {
    %c0_i32 = arith.constant 0 : i32
    %c0_i32_0 = arith.constant 0 : i32
    %c0_i32_1 = arith.constant 0 : i32
    return %c0_i32, %c0_i32_0 : i32, i32
  }
  func.func @transform_12(%arg0: i32) -> (i32, i32) {
    %c0_i32 = arith.constant 0 : i32
    %c0_i32_0 = arith.constant 0 : i32
    %c0_i32_1 = arith.constant 0 : i32
    return %c0_i32, %c0_i32_0 : i32, i32
  }
  func.func @transform_13(%arg0: i32) -> (i32, i32) {
    %c0_i32 = arith.constant 0 : i32
    %c0_i32_0 = arith.constant 0 : i32
    %c0_i32_1 = arith.constant 0 : i32
    return %c0_i32, %c0_i32_0 : i32, i32
  }
  func.func @transform_14(%arg0: i32) -> (i32, i32) {
    %c0_i32 = arith.constant 0 : i32
    %c0_i32_0 = arith.constant 0 : i32
    %c0_i32_1 = arith.constant 0 : i32
    return %c0_i32, %c0_i32_0 : i32, i32
  }
  func.func @transform_15(%arg0: i32) -> (i32, i32) {
    %c0_i32 = arith.constant 0 : i32
    %c0_i32_0 = arith.constant 0 : i32
    return %arg0, %c0_i32 : i32, i32
  }
}

</mosaic_0001>

<bundles_post_ra>
// kernel: tpu_custom_call.1
= control target key start
LH: loop header
LB: loop body
LE: loop exit
PB: predicated region body
PF: predicated region fallthrough
CT: control target
= control target key end

     0   :  { %s5047_s0 = inlined_call_operand.hbm [shape: f32[8,32], index: 0, kind: input, shape index: {}]   ;;  %s5048_s1 = inlined_call_operand.hbm [shape: bf16[32,1024], index: 1, kind: input, shape index: {}]   ;;  %s5049_s2 = inlined_call_operand.hbm [shape: f32[1,512], index: 2, kind: input, shape index: {}]   ;;  %s5050_s3 = inlined_call_operand.vmem [shape: f32[1,512], index: 3, kind: input, shape index: {}]   ;;  %s5051_s4 = inlined_call_operand.hbm [shape: bf16[512,256], index: 4, kind: input, shape index: {}]   ;;  %s5052_s5 = inlined_call_operand.hbm [shape: f32[1,256], index: 5, kind: input, shape index: {}]   ;;  %s5053_s6 = inlined_call_operand.hbm [shape: bf16[256,128], index: 6, kind: input, shape index: {}]   ;;  %s5054_s7 = inlined_call_operand.hbm [shape: f32[1,128], index: 7, kind: input, shape index: {}]   ;;  %s5055_s8 = inlined_call_operand.hbm [shape: bf16[128,512], index: 8, kind: input, shape index: {}]   ;;  %s5056_s9 = inlined_call_operand.hbm [shape: bf16[512,512], index: 9, kind: input, shape index: {}]   ;;  %s5057_s10 = inlined_call_operand.vmem [shape: f32[1,512], index: 10, kind: input, shape index: {}]   ;;  %s5058_s11 = inlined_call_operand.hbm [shape: bf16[512,256], index: 11, kind: input, shape index: {}]   ;;  %s5059_s12 = inlined_call_operand.vmem [shape: f32[1,256], index: 12, kind: input, shape index: {}]   ;;  %s5060_s13 = inlined_call_operand.vmem [shape: f32[1,256], index: 13, kind: input, shape index: {}]   ;;  %s5061_s14 = inlined_call_operand.<no memory space> [shape: f32[1,1], index: 14, kind: input, shape index: {}]   ;;  %s5062_s15 = inlined_call_operand.hbm [shape: f32[8,128], index: 15, kind: output, shape index: {}]  }
   0x1   :  { %v20_v0 = vstv %s5061_s14 }
   0x2   :  { %21 = vst [vmem:[#allocation2] sm:$0x1] %v20_v0 }
   0x3   :  { %22 = vsyncpa [#allocation4], 0 }
   0x4   :  { %23 = vsyncpa [#allocation7], 0 }
   0x5   :  { %24 = vsyncpa [#allocation10], 0 }
   0x6   :  { %25 = vsyncpa [#allocation13], 0 }
   0x7   :  { %26 = vsyncpa [#allocation16], 0 }
   0x8   :  { %27 = vsyncpa [#allocation19], 0  ;;  %s44_s22 = sshll.u32 %s5048_s1, 4  ;;  %s45_s22 = int_to_ptr.hbm [resolvable:$true] %s44_s22 }
   0x9   :  { %28 = vsyncpa [#allocation5], 0  ;;  %s4807_s23 = smov [#allocation6]   ;;  %s70_s14 = sshll.u32 %s5051_s4, 4  ;;  %s71_s14 = int_to_ptr.hbm [resolvable:$true] %s70_s14 }
   0xa   :  { %s46_s24 = sshll.u32 %s4807_s23, 4  ;;  %s4808_s27 = smov 512   ;;  %s47_s24 = int_to_ptr.vmem [resolvable:$true] %s46_s24 }
   0xb   :  { %s4809_s28 = smov 32   ;;  %s4810_s29 = smov [#allocation9]  }
   0xc   :  { %52 = dma.hbm_to_vmem [thread:$0]  %s45_s22, 2048, %s47_s24, [#allocation7], %s4808_s27, %s4808_s27, %s4809_s28  }
   0xd   :  { %s72_s30 = sshll.u32 %s4810_s29, 4  ;;  %s4811_s16 = smov 128   ;;  %s73_s30 = int_to_ptr.vmem [resolvable:$true] %s72_s30 }
   0xe   :  { %s4812_s17 = smov 8   ;;  %s94_s19 = sshll.u32 %s5053_s6, 4  ;;  %s95_s19 = int_to_ptr.hbm [resolvable:$true] %s94_s19 }
   0xf   :  { %78 = dma.hbm_to_vmem [thread:$0]  %s71_s14, 8192, %s73_s30, [#allocation10], %s4811_s16, %s4811_s16, %s4812_s17  }
  0x10   :  { %s4813_s20 = smov [#allocation12]   ;;  %s118_s23 = sshll.u32 %s5055_s8, 4  ;;  %s119_s23 = int_to_ptr.hbm [resolvable:$true] %s118_s23 }
  0x11   :  { %s96_s4 = sshll.u32 %s4813_s20, 4  ;;  %s4814_s24 = smov 64   ;;  %s97_s4 = int_to_ptr.vmem [resolvable:$true] %s96_s4 }
  0x12   :  { %s4815_s25 = smov 4   ;;  %s4816_s26 = smov [#allocation15]  }
  0x13   :  { %102 = dma.hbm_to_vmem [thread:$0]  %s95_s19, 2048, %s97_s4, [#allocation13], %s4814_s24, %s4814_s24, %s4815_s25  }
  0x14   :  { %s120_s27 = sshll.u32 %s4816_s26, 4  ;;  %s4817_s14 = smov 256   ;;  %s121_s27 = int_to_ptr.vmem [resolvable:$true] %s120_s27 }
  0x15   :  { %s4818_s28 = smov 16   ;;  %s34_s30 = sshll.u32 %s5047_s0, 4  ;;  %s35_s30 = int_to_ptr.hbm [resolvable:$true] %s34_s30 }
  0x16   :  { %126 = dma.hbm_to_vmem [thread:$0]  %s119_s23, 4096, %s121_s27, [#allocation16], %s4817_s14, %s4817_s14, %s4818_s28  }
  0x17   :  { %s4819_s1 = smov [#allocation3]   ;;  %s58_s20 = sshll.u32 %s5049_s2, 4  ;;  %s59_s20 = int_to_ptr.hbm [resolvable:$true] %s58_s20 }
  0x18   :  { %s36_s8 = sshll.u32 %s4819_s1, 4  ;;  %s4820_s4 = smov [#allocation8]   ;;  %s37_s8 = int_to_ptr.vmem [resolvable:$true] %s36_s8 }
  0x19   :  { %39 = dma.hbm_to_vmem [thread:$0]  %s35_s30, 128, %s37_s8, [#allocation4]  }
  0x1a   :  { %s60_s21 = sshll.u32 %s4820_s4, 4  ;;  %s84_s23 = sshll.u32 %s5052_s5, 4  ;;  %s61_s21 = int_to_ptr.vmem [resolvable:$true] %s60_s21  ;;  %s85_s23 = int_to_ptr.hbm [resolvable:$true] %s84_s23 }
  0x1b   :  { %63 = dma.hbm_to_vmem [thread:$0]  %s59_s20, 64, %s61_s21, [#allocation7]  }
  0x1c   :  { %s108_s26 = sshll.u32 %s5054_s7, 4  ;;  %s4821_s27 = smov [#allocation11]   ;;  %s109_s26 = int_to_ptr.hbm [resolvable:$true] %s108_s26 }
  0x1d   :  { %s86_s6 = sshll.u32 %s4821_s27, 4  ;;  %s4822_s2 = smov [#allocation14]   ;;  %s87_s6 = int_to_ptr.vmem [resolvable:$true] %s86_s6 }
  0x1e   :  { %89 = dma.hbm_to_vmem [thread:$0]  %s85_s23, 32, %s87_s6, [#allocation10]  }
  0x1f   :  { %s110_s29 = sshll.u32 %s4822_s2, 4  ;;  %s131_s8 = sshll.u32 %s5056_s9, 4  ;;  %s111_s29 = int_to_ptr.vmem [resolvable:$true] %s110_s29  ;;  %s132_s8 = int_to_ptr.hbm [resolvable:$true] %s131_s8 }
  0x20   :  { %113 = dma.hbm_to_vmem [thread:$0]  %s109_s26, 16, %s111_s29, [#allocation13]  }
  0x21   :  { %s146_s19 = sshll.u32 %s5058_s11, 4  ;;  %s4823_s20 = smov [#allocation17]   ;;  %s147_s19 = int_to_ptr.hbm [resolvable:$true] %s146_s19 }
  0x22   :  { %s133_s7 = sshll.u32 %s4823_s20, 4  ;;  %s4824_s4 = smov [#allocation18]   ;;  %s134_s7 = int_to_ptr.vmem [resolvable:$true] %s133_s7 }
  0x23   :  { %139 = dma.hbm_to_vmem [thread:$0]  %s132_s8, 16384, %s134_s7, [#allocation16], %s4817_s14, %s4817_s14, %s4818_s28  }
  0x24   :  { %s148_s21 = sshll.u32 %s4824_s4, 4  ;;  %s149_s21 = int_to_ptr.vmem [resolvable:$true] %s148_s21 }
  0x25   :  { %154 = dma.hbm_to_vmem [thread:$0]  %s147_s19, 8192, %s149_s21, [#allocation19], %s4811_s16, %s4811_s16, %s4812_s17  }
  0x26   :  { %4793 = dma.done.wait [#allocation4], 128  }
  0x27   :  { %4794 = vsyncadd [#allocation4], 4294967168 }
  0x28   :  { %4795 = dma.done.wait [#allocation7], 2112  }
  0x29   :  { %4796 = vsyncadd [#allocation7], 4294965184 }
  0x2a   :  { %4797 = dma.done.wait [#allocation10], 8224  }
  0x2b   :  { %4798 = vsyncadd [#allocation10], 4294959072 }
  0x2c   :  { %4799 = dma.done.wait [#allocation13], 2064  }
  0x2d   :  { %4800 = vsyncadd [#allocation13], 4294965232 }
  0x2e   :  { %4801 = dma.done.wait [#allocation16], 20480  }
  0x2f   :  { %4802 = vsyncadd [#allocation16], 4294946816 }
  0x30   :  { %4803 = dma.done.wait [#allocation19], 8192  }
  0x31   :  { %4804 = vsyncadd [#allocation19], 4294959104  ;;  %v2930_v1 = vld [vmem:[#allocation6 + $0x40] sm:$0xf]  ;;  %v4192_v3 = vld [vmem:[#allocation6 + $0x44] sm:$0xf] }
  0x32   :  { %v4196_v2 = vld [vmem:[#allocation6 + $0x5c] sm:$0xf0]  ;;  %v2932_v5 = vld [vmem:[#allocation6 + $0x60] sm:$0xf0]  ;;  %v202_v11 = vld [vmem:[#allocation3] sm:$0xff]  ;;  %vm300_vm0 = vcmask 261120  }
  0x33   :  { %v2931_v4 = vor.u32 %v4196_v2, %v2930_v1  ;;  %v2898_v6 = vld [vmem:[#allocation6] sm:$0xf]  ;;  %v2935_v8 = vor.u32 %v4192_v3, %v2932_v5  ;;  %v4184_v9 = vld [vmem:[#allocation6 + $0x4] sm:$0xf]  ;;  %v2938_v13 = vld [vmem:[#allocation6 + $0x48] sm:$0xf]  ;;  %v4952_v25 = vpack.c.bf16 %v202_v11, %v202_v11 }
  0x34   :  { %v4188_v7 = vld [vmem:[#allocation6 + $0x1c] sm:$0xf0]  ;;  %v2900_v10 = vld [vmem:[#allocation6 + $0x20] sm:$0xf0]  ;;  %v4197_v14 = vld [vmem:[#allocation6 + $0x64] sm:$0xf0] }
  0x35   :  { %310 = vmatpush.bf16.msra.mxu2 %v2931_v4  ;;  %v2899_v12 = vor.u32 %v4188_v7, %v2898_v6  ;;  %v4193_v15 = vld [vmem:[#allocation6 + $0x4c] sm:$0xf]  ;;  %323 = vmatpush.bf16.msra.mxu3 %v2935_v8  ;;  %v2903_v16 = vor.u32 %v4184_v9, %v2900_v10  ;;  %v2939_v17 = vor.u32 %v4197_v14, %v2938_v13  ;;  %v2906_v19 = vld [vmem:[#allocation6 + $0x8] sm:$0xf]  ;;  %v2946_v24 = vld [vmem:[#allocation6 + $0x50] sm:$0xf] }
  0x36   :  { %v2940_v18 = vld [vmem:[#allocation6 + $0x68] sm:$0xf0]  ;;  %v4189_v20 = vld [vmem:[#allocation6 + $0x24] sm:$0xf0]  ;;  %v4198_v26 = vld [vmem:[#allocation6 + $0x6c] sm:$0xf0] }
  0x37   :  { %v2943_v21 = vor.u32 %v4193_v15, %v2940_v18  ;;  %v4185_v22 = vld [vmem:[#allocation6 + $0xc] sm:$0xf]  ;;  %v4194_v27 = vld [vmem:[#allocation6 + $0x54] sm:$0xf]  ;;  %v2947_v29 = vor.u32 %v4198_v26, %v2946_v24  ;;  %v2914_v31 = vld [vmem:[#allocation6 + $0x10] sm:$0xf]  ;;  %v2907_v34 = vor.u32 %v4189_v20, %v2906_v19 }
  0x38   :  { %v2908_v23 = vld [vmem:[#allocation6 + $0x28] sm:$0xf0]  ;;  %v2948_v28 = vld [vmem:[#allocation6 + $0x70] sm:$0xf0]  ;;  %v4190_v32 = vld [vmem:[#allocation6 + $0x2c] sm:$0xf0] }
  0x39   :  { %311 = vmatpush.bf16.msra.mxu2 %v2899_v12  ;;  %v2951_v30 = vor.u32 %v4194_v27, %v2948_v28  ;;  %v4186_v33 = vld [vmem:[#allocation6 + $0x14] sm:$0xf]  ;;  %324 = vmatpush.bf16.msra.mxu3 %v2903_v16  ;;  %v4215_v37 = vld [vmem:[#allocation9 + $0x74] sm:$0xf0]  ;;  %v2911_v38 = vor.u32 %v4185_v22, %v2908_v23  ;;  %v2915_v39 = vor.u32 %v4190_v32, %v2914_v31  ;;  %v3018_v45 = vld [vmem:[#allocation9 + $0x60] sm:$0xf] }
  0x3a   :  { %v2916_v35 = vld [vmem:[#allocation6 + $0x30] sm:$0xf0]  ;;  %362 = vmatpush.bf16.msra.mxu0 %v2947_v29  ;;  %v4231_v41 = vld [vmem:[#allocation9 + $0xf4] sm:$0xf0]  ;;  %v4213_v46 = vld [vmem:[#allocation9 + $0x64] sm:$0xf0] }
  0x3b   :  { %v3026_v36 = vld [vmem:[#allocation9 + $0x70] sm:$0xf]  ;;  %375 = vmatpush.bf16.msra.mxu1 %v2951_v30  ;;  %v2919_v42 = vor.u32 %v4186_v33, %v2916_v35  ;;  %v3082_v47 = vld [vmem:[#allocation9 + $0xe0] sm:$0xf]  ;;  %v4229_v48 = vld [vmem:[#allocation9 + $0xe4] sm:$0xf0]  ;;  %v3019_v54 = vor.u32 %v4213_v46, %v3018_v45 }
  0x3c   :  { %v3090_v40 = vld [vmem:[#allocation9 + $0xf0] sm:$0xf]  ;;  %2960 = vmatmul.msk.bf16.vlgmr.msra.gmra.mxu2 %vm300_vm0, %v4952_v25  ;;  %v3027_v43 = vor.u32 %v4215_v37, %v3026_v36  ;;  %2961 = vmatmul.msk.bf16.vlgmr.msra.gmra.mxu3 %vm300_vm0, %v4952_v25  ;;  %v2954_v49 = vld [vmem:[#allocation6 + $0x58] sm:$0xf]  ;;  %v4195_v52 = vld [vmem:[#allocation6 + $0x5c] sm:$0xf]  ;;  %v3083_v58 = vor.u32 %v4229_v48, %v3082_v47 }
  0x3d   :  { %336 = vmatpush.bf16.msrb.mxu2 %v2939_v17  ;;  %349 = vmatpush.bf16.msrb.mxu3 %v2943_v21  ;;  %v3091_v44 = vor.u32 %v4231_v41, %v3090_v40  ;;  %v4199_v50 = vld [vmem:[#allocation6 + $0x74] sm:$0xf0]  ;;  %v2956_v53 = vld [vmem:[#allocation6 + $0x78] sm:$0xf0]  ;;  %v3010_v55 = vld [vmem:[#allocation9 + $0x50] sm:$0xf] }
  0x3e   :  { %363 = vmatpush.bf16.msra.mxu0 %v2915_v39  ;;  %v2955_v51 = vor.u32 %v4199_v50, %v2954_v49  ;;  %v4211_v56 = vld [vmem:[#allocation9 + $0x54] sm:$0xf0]  ;;  %v2959_v57 = vor.u32 %v4195_v52, %v2956_v53  ;;  %v2922_v59 = vld [vmem:[#allocation6 + $0x18] sm:$0xf]  ;;  %v3074_v62 = vld [vmem:[#allocation9 + $0xd0] sm:$0xf] }
  0x3f   :  { %376 = vmatpush.bf16.msra.mxu1 %v2919_v42  ;;  %v4191_v60 = vld [vmem:[#allocation6 + $0x34] sm:$0xf0]  ;;  %v4187_v61 = vld [vmem:[#allocation6 + $0x1c] sm:$0xf]  ;;  %v3011_v3 = vor.u32 %v4211_v56, %v3010_v55  ;;  %v3002_v5 = vld [vmem:[#allocation9 + $0x40] sm:$0xf] }
  0x40   :  { %v4227_v63 = vld [vmem:[#allocation9 + $0xd4] sm:$0xf0]  ;;  %v2923_v0 = vor.u32 %v4191_v60, %v2922_v59  ;;  %v4209_v6 = vld [vmem:[#allocation9 + $0x44] sm:$0xf0]  ;;  %v3066_v7 = vld [vmem:[#allocation9 + $0xc0] sm:$0xf] }
  0x41   :  { %337 = vmatpush.bf16.msrb.mxu2 %v2907_v34  ;;  %350 = vmatpush.bf16.msrb.mxu3 %v2911_v38  ;;  %v2924_v1 = vld [vmem:[#allocation6 + $0x38] sm:$0xf0]  ;;  %v3075_v4 = vor.u32 %v4227_v63, %v3074_v62  ;;  %v4225_v8 = vld [vmem:[#allocation9 + $0xc4] sm:$0xf0]  ;;  %v3154_v9 = vld [vmem:[#allocation9 + $0x170] sm:$0xf]  ;;  %v3003_v13 = vor.u32 %v4209_v6, %v3002_v5 }
  0x42   :  { %820 = vmatpush.bf16.msrb.mxu0 %v3027_v43  ;;  %v2927_v2 = vor.u32 %v4187_v61, %v2924_v1  ;;  %2965 = vmatmul.msk.bf16.vlgmr.msra.gmra.mxu1 %vm300_vm0, %v4952_v25  ;;  %v4247_v10 = vld [vmem:[#allocation9 + $0x174] sm:$0xf0]  ;;  %v3218_v11 = vld [vmem:[#allocation9 + $0x1f0] sm:$0xf]  ;;  %v3067_v14 = vor.u32 %v4225_v8, %v3066_v7  ;;  %v3146_v21 = vld [vmem:[#allocation9 + $0x160] sm:$0xf] }
  0x43   :  { %833 = vmatpush.bf16.msrb.mxu1 %v3091_v44  ;;  %2964 = vmatmul.msk.bf16.vlgmr.msra.gmra.mxu0 %vm300_vm0, %v4952_v25  ;;  %v4263_v12 = vld [vmem:[#allocation9 + $0x1f4] sm:$0xf0]  ;;  %v2994_v15 = vld [vmem:[#allocation9 + $0x30] sm:$0xf]  ;;  %v3155_v19 = vor.u32 %v4247_v10, %v3154_v9  ;;  %v4245_v22 = vld [vmem:[#allocation9 + $0x164] sm:$0xf0] }
  0x44   :  { %v4207_v16 = vld [vmem:[#allocation9 + $0x34] sm:$0xf0]  ;;  %v3058_v17 = vld [vmem:[#allocation9 + $0xb0] sm:$0xf]  ;;  %v3219_v20 = vor.u32 %v4263_v12, %v3218_v11  ;;  %v3210_v23 = vld [vmem:[#allocation9 + $0x1e0] sm:$0xf]  ;;  %v3147_v32 = vor.u32 %v4245_v22, %v3146_v21 }
  0x45   :  { %388 = vmatpush.bf16.msra.mxu2 %v2955_v51  ;;  %401 = vmatpush.bf16.msra.mxu3 %v2959_v57  ;;  %v4223_v18 = vld [vmem:[#allocation9 + $0xb4] sm:$0xf0]  ;;  %v4261_v24 = vld [vmem:[#allocation9 + $0x1e4] sm:$0xf0]  ;;  %v2995_v26 = vor.u32 %v4207_v16, %v2994_v15  ;;  %v2986_v28 = vld [vmem:[#allocation9 + $0x20] sm:$0xf] }
  0x46   :  { %821 = vmatpush.bf16.msrb.mxu0 %v3019_v54  ;;  %v3059_v27 = vor.u32 %v4223_v18, %v3058_v17  ;;  %v4205_v29 = vld [vmem:[#allocation9 + $0x24] sm:$0xf0]  ;;  %v3050_v30 = vld [vmem:[#allocation9 + $0xa0] sm:$0xf]  ;;  %v3211_v33 = vor.u32 %v4261_v24, %v3210_v23  ;;  %v3138_v34 = vld [vmem:[#allocation9 + $0x150] sm:$0xf] }
  0x47   :  { %834 = vmatpush.bf16.msrb.mxu1 %v3083_v58  ;;  %v4221_v31 = vld [vmem:[#allocation9 + $0xa4] sm:$0xf0]  ;;  %v4243_v35 = vld [vmem:[#allocation9 + $0x154] sm:$0xf0]  ;;  %v3202_v36 = vld [vmem:[#allocation9 + $0x1d0] sm:$0xf]  ;;  %v2987_v38 = vor.u32 %v4205_v29, %v2986_v28 }
  0x48   :  { %v4259_v37 = vld [vmem:[#allocation9 + $0x1d4] sm:$0xf0]  ;;  %v2978_v39 = vld [vmem:[#allocation9 + $0x10] sm:$0xf]  ;;  %v3051_v40 = vor.u32 %v4221_v31, %v3050_v30  ;;  %v3139_v44 = vor.u32 %v4243_v35, %v3138_v34  ;;  %v3130_v46 = vld [vmem:[#allocation9 + $0x140] sm:$0xf] }
  0x49   :  { %389 = vmatpush.bf16.msra.mxu2 %v2923_v0  ;;  %402 = vmatpush.bf16.msra.mxu3 %v2927_v2  ;;  %v4203_v41 = vld [vmem:[#allocation9 + $0x14] sm:$0xf0]  ;;  %v3042_v42 = vld [vmem:[#allocation9 + $0x90] sm:$0xf]  ;;  %v3203_v45 = vor.u32 %v4259_v37, %v3202_v36  ;;  %v4241_v47 = vld [vmem:[#allocation9 + $0x144] sm:$0xf0] }
  0x4a   :  { %822 = vmatpush.bf16.msrb.mxu0 %v3011_v3  ;;  %v4219_v43 = vld [vmem:[#allocation9 + $0x94] sm:$0xf0]  ;;  %v3194_v48 = vld [vmem:[#allocation9 + $0x1c0] sm:$0xf]  ;;  %v4257_v49 = vld [vmem:[#allocation9 + $0x1c4] sm:$0xf0]  ;;  %v2979_v50 = vor.u32 %v4203_v41, %v2978_v39  ;;  %v3131_v56 = vor.u32 %v4241_v47, %v3130_v46 }
  0x4b   :  { %835 = vmatpush.bf16.msrb.mxu1 %v3075_v4  ;;  %v2970_v51 = vld [vmem:[#allocation9] sm:$0xf]  ;;  %v3043_v52 = vor.u32 %v4219_v43, %v3042_v42  ;;  %v4201_v53 = vld [vmem:[#allocation9 + $0x4] sm:$0xf0]  ;;  %v3195_v57 = vor.u32 %v4257_v49, %v3194_v48  ;;  %v4214_v58 = vld [vmem:[#allocation9 + $0x74] sm:$0xf] }
  0x4c   :  { %2962 = vmatmul.msk.bf16.vlgmr.msrb.gmra.mxu2 %vm300_vm0, %v4952_v25  ;;  %2963 = vmatmul.msk.bf16.vlgmr.msrb.gmra.mxu3 %vm300_vm0, %v4952_v25  ;;  %v3034_v54 = vld [vmem:[#allocation9 + $0x80] sm:$0xf]  ;;  %v4217_v55 = vld [vmem:[#allocation9 + $0x84] sm:$0xf0]  ;;  %v3028_v59 = vld [vmem:[#allocation9 + $0x78] sm:$0xf0]  ;;  %v2971_v0 = vor.u32 %v4201_v53, %v2970_v51 }
  0x4d   :  { %846 = vmatpush.bf16.msrb.mxu2 %v3155_v19  ;;  %859 = vmatpush.bf16.msrb.mxu3 %v3219_v20  ;;  %v4230_v60 = vld [vmem:[#allocation9 + $0xf4] sm:$0xf]  ;;  %v3092_v61 = vld [vmem:[#allocation9 + $0xf8] sm:$0xf0]  ;;  %v3122_v62 = vld [vmem:[#allocation9 + $0x130] sm:$0xf]  ;;  %v3035_v3 = vor.u32 %v4217_v55, %v3034_v54  ;;  %v3031_v4 = vor.u32 %v4214_v58, %v3028_v59 }
  0x4e   :  { %823 = vmatpush.bf16.msrb.mxu0 %v3003_v13  ;;  %v4239_v63 = vld [vmem:[#allocation9 + $0x134] sm:$0xf0]  ;;  %v3186_v1 = vld [vmem:[#allocation9 + $0x1b0] sm:$0xf]  ;;  %v3095_v5 = vor.u32 %v4230_v60, %v3092_v61  ;;  %v4212_v7 = vld [vmem:[#allocation9 + $0x64] sm:$0xf] }
  0x4f   :  { %836 = vmatpush.bf16.msrb.mxu1 %v3067_v14  ;;  %v4255_v2 = vld [vmem:[#allocation9 + $0x1b4] sm:$0xf0]  ;;  %v3123_v6 = vor.u32 %v4239_v63, %v3122_v62  ;;  %v3020_v8 = vld [vmem:[#allocation9 + $0x68] sm:$0xf0]  ;;  %v4228_v9 = vld [vmem:[#allocation9 + $0xe4] sm:$0xf] }
  0x50   :  { %v3187_v10 = vor.u32 %v4255_v2, %v3186_v1  ;;  %v3084_v11 = vld [vmem:[#allocation9 + $0xe8] sm:$0xf0]  ;;  %v3114_v12 = vld [vmem:[#allocation9 + $0x120] sm:$0xf]  ;;  %v4237_v13 = vld [vmem:[#allocation9 + $0x124] sm:$0xf0]  ;;  %v3023_v16 = vor.u32 %v4212_v7, %v3020_v8 }
  0x51   :  { %847 = vmatpush.bf16.msrb.mxu2 %v3147_v32  ;;  %860 = vmatpush.bf16.msrb.mxu3 %v3211_v33  ;;  %v3178_v14 = vld [vmem:[#allocation9 + $0x1a0] sm:$0xf]  ;;  %v4253_v15 = vld [vmem:[#allocation9 + $0x1a4] sm:$0xf0]  ;;  %v3087_v17 = vor.u32 %v4228_v9, %v3084_v11  ;;  %v3115_v18 = vor.u32 %v4237_v13, %v3114_v12  ;;  %v4210_v20 = vld [vmem:[#allocation9 + $0x54] sm:$0xf] }
  0x52   :  { %824 = vmatpush.bf16.msrb.mxu0 %v2995_v26  ;;  %v3179_v19 = vor.u32 %v4253_v15, %v3178_v14  ;;  %v3012_v21 = vld [vmem:[#allocation9 + $0x58] sm:$0xf0]  ;;  %v4226_v22 = vld [vmem:[#allocation9 + $0xd4] sm:$0xf]  ;;  %v4235_v28 = vld [vmem:[#allocation9 + $0x114] sm:$0xf0] }
  0x53   :  { %837 = vmatpush.bf16.msrb.mxu1 %v3059_v27  ;;  %v3015_v23 = vor.u32 %v4210_v20, %v3012_v21  ;;  %v3076_v24 = vld [vmem:[#allocation9 + $0xd8] sm:$0xf0]  ;;  %v3106_v27 = vld [vmem:[#allocation9 + $0x110] sm:$0xf]  ;;  %v4251_v31 = vld [vmem:[#allocation9 + $0x194] sm:$0xf0] }
  0x54   :  { %v3079_v26 = vor.u32 %v4226_v22, %v3076_v24  ;;  %v3170_v29 = vld [vmem:[#allocation9 + $0x190] sm:$0xf]  ;;  %v3107_v30 = vor.u32 %v4235_v28, %v3106_v27  ;;  %v4208_v32 = vld [vmem:[#allocation9 + $0x44] sm:$0xf]  ;;  %v3004_v33 = vld [vmem:[#allocation9 + $0x48] sm:$0xf0] }
  0x55   :  { %848 = vmatpush.bf16.msrb.mxu2 %v3139_v44  ;;  %861 = vmatpush.bf16.msrb.mxu3 %v3203_v45  ;;  %v3007_v34 = vor.u32 %v4208_v32, %v3004_v33  ;;  %v4224_v35 = vld [vmem:[#allocation9 + $0xc4] sm:$0xf]  ;;  %v3068_v36 = vld [vmem:[#allocation9 + $0xc8] sm:$0xf0]  ;;  %v4233_v39 = vld [vmem:[#allocation9 + $0x104] sm:$0xf0] }
  0x56   :  { %825 = vmatpush.bf16.msrb.mxu0 %v2987_v38  ;;  %v3071_v37 = vor.u32 %v4224_v35, %v3068_v36  ;;  %v3098_v38 = vld [vmem:[#allocation9 + $0x100] sm:$0xf]  ;;  %v4249_v42 = vld [vmem:[#allocation9 + $0x184] sm:$0xf0]  ;;  %v4206_v43 = vld [vmem:[#allocation9 + $0x34] sm:$0xf] }
  0x57   :  { %838 = vmatpush.bf16.msrb.mxu1 %v3051_v40  ;;  %v3162_v40 = vld [vmem:[#allocation9 + $0x180] sm:$0xf]  ;;  %v3099_v41 = vor.u32 %v4233_v39, %v3098_v38  ;;  %v2996_v44 = vld [vmem:[#allocation9 + $0x38] sm:$0xf0]  ;;  %v4222_v47 = vld [vmem:[#allocation9 + $0xb4] sm:$0xf] }
  0x58   :  { %v3163_v45 = vor.u32 %v4249_v42, %v3162_v40  ;;  %v2999_v46 = vor.u32 %v4206_v43, %v2996_v44  ;;  %v3060_v48 = vld [vmem:[#allocation9 + $0xb8] sm:$0xf0]  ;;  %v4246_v49 = vld [vmem:[#allocation9 + $0x174] sm:$0xf]  ;;  %v4220_v58 = vld [vmem:[#allocation9 + $0xa4] sm:$0xf] }
  0x59   :  { %849 = vmatpush.bf16.msrb.mxu2 %v3131_v56  ;;  %862 = vmatpush.bf16.msrb.mxu3 %v3195_v57  ;;  %v3156_v51 = vld [vmem:[#allocation9 + $0x178] sm:$0xf0]  ;;  %v4204_v56 = vld [vmem:[#allocation9 + $0x24] sm:$0xf]  ;;  %v2988_v57 = vld [vmem:[#allocation9 + $0x28] sm:$0xf0] }
  0x5a   :  { %826 = vmatpush.bf16.msrb.mxu0 %v2979_v50  ;;  %v3063_v50 = vor.u32 %v4222_v47, %v3060_v48  ;;  %v3220_v53 = vld [vmem:[#allocation9 + $0x1f8] sm:$0xf0]  ;;  %v3159_v54 = vor.u32 %v4246_v49, %v3156_v51  ;;  %v2991_v59 = vor.u32 %v4204_v56, %v2988_v57  ;;  %v3052_v60 = vld [vmem:[#allocation9 + $0xa8] sm:$0xf0]  ;;  %v4244_v61 = vld [vmem:[#allocation9 + $0x164] sm:$0xf] }
  0x5b   :  { %839 = vmatpush.bf16.msrb.mxu1 %v3043_v52  ;;  %v4262_v52 = vld [vmem:[#allocation9 + $0x1f4] sm:$0xf]  ;;  %v3148_v62 = vld [vmem:[#allocation9 + $0x168] sm:$0xf0]  ;;  %v3055_v63 = vor.u32 %v4220_v58, %v3052_v60  ;;  %v4260_v1 = vld [vmem:[#allocation9 + $0x1e4] sm:$0xf] }
  0x5c   :  { %2966 = vmatmul.msk.bf16.vlgmr.msra.gmra.mxu2 %vm300_vm0, %v4952_v25  ;;  %2967 = vmatmul.msk.bf16.vlgmr.msra.gmra.mxu3 %vm300_vm0, %v4952_v25  ;;  %v3171_v25 = vor.u32 %v4251_v31, %v3170_v29  ;;  %v3223_v55 = vor.u32 %v4262_v52, %v3220_v53  ;;  %v3212_v2 = vld [vmem:[#allocation9 + $0x1e8] sm:$0xf0]  ;;  %v3044_v8 = vld [vmem:[#allocation9 + $0x98] sm:$0xf0]  ;;  %v4242_v9 = vld [vmem:[#allocation9 + $0x154] sm:$0xf] }
  0x5d   :  { %850 = vmatpush.bf16.msrb.mxu2 %v3123_v6  ;;  %863 = vmatpush.bf16.msrb.mxu3 %v3187_v10  ;;  %v4218_v6 = vld [vmem:[#allocation9 + $0x94] sm:$0xf]  ;;  %v3140_v10 = vld [vmem:[#allocation9 + $0x158] sm:$0xf0]  ;;  %v3036_v20 = vld [vmem:[#allocation9 + $0x88] sm:$0xf0] }
  0x5e   :  { %827 = vmatpush.bf16.msrb.mxu0 %v2971_v0  ;;  %v3151_v0 = vor.u32 %v4244_v61, %v3148_v62  ;;  %v3047_v11 = vor.u32 %v4218_v6, %v3044_v8  ;;  %v3143_v12 = vor.u32 %v4242_v9, %v3140_v10  ;;  %v4258_v13 = vld [vmem:[#allocation9 + $0x1d4] sm:$0xf]  ;;  %v3204_v14 = vld [vmem:[#allocation9 + $0x1d8] sm:$0xf0]  ;;  %v4240_v21 = vld [vmem:[#allocation9 + $0x144] sm:$0xf] }
  0x5f   :  { %840 = vmatpush.bf16.msrb.mxu1 %v3035_v3  ;;  %v3215_v3 = vor.u32 %v4260_v1, %v3212_v2  ;;  %v3207_v15 = vor.u32 %v4258_v13, %v3204_v14  ;;  %v3132_v22 = vld [vmem:[#allocation9 + $0x148] sm:$0xf0]  ;;  %v4238_v29 = vld [vmem:[#allocation9 + $0x134] sm:$0xf]  ;;  %v3188_v33 = vld [vmem:[#allocation9 + $0x1b8] sm:$0xf0] }
  0x60   :  { %v3135_v24 = vor.u32 %v4240_v21, %v3132_v22  ;;  %v3196_v27 = vld [vmem:[#allocation9 + $0x1c8] sm:$0xf0]  ;;  %v4254_v31 = vld [vmem:[#allocation9 + $0x1b4] sm:$0xf]  ;;  %v4252_v36 = vld [vmem:[#allocation9 + $0x1a4] sm:$0xf] }
  0x61   :  { %851 = vmatpush.bf16.msrb.mxu2 %v3115_v18  ;;  %864 = vmatpush.bf16.msrb.mxu3 %v3179_v19  ;;  %v4216_v18 = vld [vmem:[#allocation9 + $0x84] sm:$0xf]  ;;  %v3116_v35 = vld [vmem:[#allocation9 + $0x128] sm:$0xf0]  ;;  %v3108_v42 = vld [vmem:[#allocation9 + $0x118] sm:$0xf0] }
  0x62   :  { %872 = vmatpush.bf16.msra.mxu0 %v3031_v4  ;;  %v4202_v4 = vld [vmem:[#allocation9 + $0x14] sm:$0xf]  ;;  %v3180_v38 = vld [vmem:[#allocation9 + $0x1a8] sm:$0xf0]  ;;  %v3172_v44 = vld [vmem:[#allocation9 + $0x198] sm:$0xf0] }
  0x63   :  { %885 = vmatpush.bf16.msra.mxu1 %v3095_v5  ;;  %v2980_v5 = vld [vmem:[#allocation9 + $0x18] sm:$0xf0]  ;;  %v3183_v40 = vor.u32 %v4252_v36, %v3180_v38  ;;  %v4250_v43 = vld [vmem:[#allocation9 + $0x194] sm:$0xf]  ;;  %v3100_v51 = vld [vmem:[#allocation9 + $0x108] sm:$0xf0] }
  0x64   :  { %v2983_v7 = vor.u32 %v4202_v4, %v2980_v5  ;;  %v3175_v48 = vor.u32 %v4250_v43, %v3172_v44  ;;  %v4271_v21 = vld [vmem:[#allocation12 + $0x38] sm:$0xff]  ;;  %v4270_v22 = vld [vmem:[#allocation12 + $0x30] sm:$0xff]  ;;  %v3402_v43 = vld [vmem:[#allocation15 + $0xe0] sm:$0xf]  ;;  %s2881_s23 = sshll.u32 %s5062_s15, 4  ;;  %s2882_s23 = int_to_ptr.hbm [resolvable:$true] %s2881_s23 }
  0x65   :  { %852 = vmatpush.bf16.msrb.mxu2 %v3107_v30  ;;  %865 = vmatpush.bf16.msrb.mxu3 %v3171_v25  ;;  %v3124_v30 = vld [vmem:[#allocation9 + $0x138] sm:$0xf0]  ;;  %v3191_v25 = vor.u32 %v4254_v31, %v3188_v33  ;;  %v4277_v31 = vld [vmem:[#allocation12 + $0x68] sm:$0xff]  ;;  %v4276_v33 = vld [vmem:[#allocation12 + $0x60] sm:$0xff] }
  0x66   :  { %873 = vmatpush.bf16.msra.mxu0 %v3023_v16  ;;  %v4200_v16 = vld [vmem:[#allocation9 + $0x4] sm:$0xf]  ;;  %v3127_v32 = vor.u32 %v4238_v29, %v3124_v30  ;;  %v4278_v29 = vld [vmem:[#allocation12 + $0x70] sm:$0xff]  ;;  %v4265_v30 = vld [vmem:[#allocation12 + $0x8] sm:$0xff] }
  0x67   :  { %886 = vmatpush.bf16.msra.mxu1 %v3087_v17  ;;  %v2972_v17 = vld [vmem:[#allocation9 + $0x8] sm:$0xf0]  ;;  %v4274_v36 = vld [vmem:[#allocation12 + $0x50] sm:$0xff] }
  0x68   :  { %v2975_v19 = vor.u32 %v4200_v16, %v2972_v17  ;;  %v4310_v44 = vld [vmem:[#allocation15 + $0xec] sm:$0xf0] }
  0x69   :  { %853 = vmatpush.bf16.msrb.mxu2 %v3099_v41  ;;  %866 = vmatpush.bf16.msrb.mxu3 %v3163_v45  ;;  %v4234_v41 = vld [vmem:[#allocation9 + $0x114] sm:$0xf] }
  0x6a   :  { %874 = vmatpush.bf16.msra.mxu0 %v3015_v23  ;;  %v3039_v23 = vor.u32 %v4216_v18, %v3036_v20  ;;  %v3111_v47 = vor.u32 %v4234_v41, %v3108_v42  ;;  %v4272_v41 = vld [vmem:[#allocation12 + $0x40] sm:$0xff] }
  0x6b   :  { %887 = vmatpush.bf16.msra.mxu1 %v3079_v26  ;;  %v4256_v26 = vld [vmem:[#allocation9 + $0x1c4] sm:$0xf] }
  0x6c   :  { %v3199_v28 = vor.u32 %v4256_v26, %v3196_v27  ;;  %v4267_v26 = vld [vmem:[#allocation12 + $0x18] sm:$0xff] }
  0x6d   :  { %898 = vmatpush.bf16.msra.mxu2 %v3159_v54  ;;  %911 = vmatpush.bf16.msra.mxu3 %v3223_v55  ;;  %v4248_v54 = vld [vmem:[#allocation9 + $0x184] sm:$0xf]  ;;  %v3164_v55 = vld [vmem:[#allocation9 + $0x188] sm:$0xf0]  ;;  %v4279_v27 = vld [vmem:[#allocation12 + $0x78] sm:$0xff] }
  0x6e   :  { %875 = vmatpush.bf16.msra.mxu0 %v3007_v34  ;;  %v4236_v34 = vld [vmem:[#allocation9 + $0x124] sm:$0xf]  ;;  %v3167_v60 = vor.u32 %v4248_v54, %v3164_v55  ;;  %v4309_v55 = vld [vmem:[#allocation15 + $0xec] sm:$0xf] }
  0x6f   :  { %888 = vmatpush.bf16.msra.mxu1 %v3071_v37  ;;  %v408_v37 = vld [vmem:[#allocation8] sm:$0xf]  ;;  %v3119_v39 = vor.u32 %v4236_v34, %v3116_v35 }
  0x70   :  { %v410_v45 = vperm.slane %v408_v37, 0  ;;  %v413_v4 = vperm.slane %v408_v37, 3 }
  0x71   :  { %899 = vmatpush.bf16.msra.mxu2 %v3151_v0  ;;  %912 = vmatpush.bf16.msra.mxu3 %v3215_v3  ;;  %v412_v3 = vperm.slane %v408_v37, 2 }
  0x72   :  { %876 = vmatpush.bf16.msra.mxu0 %v2999_v46  ;;  %v411_v46 = vperm.slane %v408_v37, 1  ;;  %v4273_v37 = vld [vmem:[#allocation12 + $0x48] sm:$0xff] }
  0x73   :  { %889 = vmatpush.bf16.msra.mxu1 %v3063_v50  ;;  %v4232_v50 = vld [vmem:[#allocation9 + $0x104] sm:$0xf] }
  0x74   :  { %v3103_v58 = vor.u32 %v4232_v50, %v3100_v51  ;;  %v4311_v50 = vld [vmem:[#allocation15 + $0xf4] sm:$0xf0] }
  0x75   :  { %900 = vmatpush.bf16.msra.mxu2 %v3143_v12  ;;  %913 = vmatpush.bf16.msra.mxu3 %v3207_v15 }
  0x76   :  { %877 = vmatpush.bf16.msra.mxu0 %v2991_v59 }
  0x77   :  { %890 = vmatpush.bf16.msra.mxu1 %v3055_v63 }
  0x79   :  { %901 = vmatpush.bf16.msra.mxu2 %v3135_v24  ;;  %914 = vmatpush.bf16.msra.mxu3 %v3199_v28  ;;  %v4268_v24 = vld [vmem:[#allocation12 + $0x20] sm:$0xff]  ;;  %v4266_v28 = vld [vmem:[#allocation12 + $0x10] sm:$0xff] }
  0x7a   :  { %878 = vmatpush.bf16.msra.mxu0 %v2983_v7 }
  0x7b   :  { %891 = vmatpush.bf16.msra.mxu1 %v3047_v11 }
  0x7d   :  { %902 = vmatpush.bf16.msra.mxu2 %v3127_v32  ;;  %915 = vmatpush.bf16.msra.mxu3 %v3191_v25  ;;  %v4264_v32 = vld [vmem:[#allocation12] sm:$0xff]  ;;  %v4275_v25 = vld [vmem:[#allocation12 + $0x58] sm:$0xff] }
  0x7e   :  { %879 = vmatpush.bf16.msra.mxu0 %v2975_v19 }
  0x7f   :  { %892 = vmatpush.bf16.msra.mxu1 %v3039_v23  ;;  %v4269_v23 = vld [vmem:[#allocation12 + $0x28] sm:$0xff] }
  0x81   :  { %903 = vmatpush.bf16.msra.mxu2 %v3119_v39  ;;  %916 = vmatpush.bf16.msra.mxu3 %v3183_v40  ;;  %v494_v40 = vld [vmem:[#allocation11] sm:$0x3] }
  0x82   :  { %v496_v42 = vperm.slane %v494_v40, 0 }
  0x85   :  { %904 = vmatpush.bf16.msra.mxu2 %v3111_v47  ;;  %917 = vmatpush.bf16.msra.mxu3 %v3175_v48  ;;  %v3403_v47 = vor.u32 %v4310_v44, %v3402_v43  ;;  %v3404_v48 = vld [vmem:[#allocation15 + $0xf0] sm:$0xf0]  ;;  %v3354_v44 = vld [vmem:[#allocation15 + $0x80] sm:$0xf] }
  0x89   :  { %905 = vmatpush.bf16.msra.mxu2 %v3103_v58  ;;  %918 = vmatpush.bf16.msra.mxu3 %v3167_v60 }
  0xbf   :  { %v313_v49 = vpop.f32.mrf.mxu2  ;;  %v326_v53 = vpop.f32.mrf.mxu3 }
  0xc0   :  { %v418_v52 = vadd.f32 %v410_v45, %v313_v49  ;;  %v419_v56 = vadd.f32 %v411_v46, %v326_v53  ;;  %v4970_v0 = vpop.f32.mrf.mxu0  ;;  %v4972_v2 = vpop.f32.mrf.mxu1  ;;  %v4308_v45 = vld [vmem:[#allocation15 + $0xe4] sm:$0xf]  ;;  %v3410_v49 = vld [vmem:[#allocation15 + $0xe8] sm:$0xf] }
  0xc1   :  { %v3407_v53 = vor.u32 %v4308_v45, %v3404_v48  ;;  %v3411_v54 = vor.u32 %v4311_v50, %v3410_v49  ;;  %v4298_v45 = vld [vmem:[#allocation15 + $0x8c] sm:$0xf0]  ;;  %v3356_v48 = vld [vmem:[#allocation15 + $0x90] sm:$0xf0]  ;;  %v3362_v49 = vld [vmem:[#allocation15 + $0x88] sm:$0xf] }
  0xc2   :  { %v422_v57 = vmax.f32 %v418_v52, 0.0  ;;  %v423_v59 = vmax.f32 %v419_v56, 0.0  ;;  %v3412_v56 = vld [vmem:[#allocation15 + $0xf8] sm:$0xf0]  ;;  %v4299_v50 = vld [vmem:[#allocation15 + $0x94] sm:$0xf0] }
  0xc4   :  { %v426_v61 = vpack.c.bf16 %v422_v57, %v422_v57  ;;  %v427_v62 = vpack.c.bf16 %v423_v59, %v423_v59  ;;  %v3415_v57 = vor.u32 %v4309_v55, %v3412_v56  ;;  %v3338_v55 = vld [vmem:[#allocation15 + $0x60] sm:$0xf] }
  0xc6   :  { %828 = vmatmul.bf16.vlgmr.msrb.gmra.mxu0 %v426_v61  ;;  %841 = vmatmul.bf16.vlgmr.msrb.gmra.mxu1 %v427_v62 }
  0xc7   :  { %v315_v63 = vpop.f32.mrf.mxu2  ;;  %v328_v1 = vpop.f32.mrf.mxu3  ;;  %1060 = vmatpush.bf16.msrb.mxu0 %v4271_v21  ;;  %1073 = vmatpush.bf16.msrb.mxu1 %v4279_v27  ;;  %v4306_v21 = vld [vmem:[#allocation15 + $0xcc] sm:$0xf0]  ;;  %v4307_v27 = vld [vmem:[#allocation15 + $0xd4] sm:$0xf0] }
  0xc8   :  { %v367_v6 = vpop.f32.mrf.mxu0  ;;  %v380_v9 = vpop.f32.mrf.mxu1 }
  0xcb   :  { %1061 = vmatpush.bf16.msrb.mxu0 %v4270_v22  ;;  %1074 = vmatpush.bf16.msrb.mxu1 %v4278_v29  ;;  %v4304_v22 = vld [vmem:[#allocation15 + $0xc4] sm:$0xf] }
  0xcf   :  { %v339_v5 = vpop.f32.mrf.mxu2  ;;  %v352_v8 = vpop.f32.mrf.mxu3  ;;  %1062 = vmatpush.bf16.msrb.mxu0 %v4269_v23  ;;  %1075 = vmatpush.bf16.msrb.mxu1 %v4277_v31  ;;  %v3396_v31 = vld [vmem:[#allocation15 + $0xd8] sm:$0xf0] }
  0xd0   :  { %v420_v7 = vadd.f32 %v412_v3, %v339_v5  ;;  %v421_v10 = vadd.f32 %v413_v4, %v352_v8  ;;  %v497_v4 = vperm.slane %v494_v40, 1  ;;  %v4301_v40 = vld [vmem:[#allocation15 + $0xac] sm:$0xf] }
  0xd2   :  { %v424_v11 = vmax.f32 %v420_v7, 0.0  ;;  %v425_v12 = vmax.f32 %v421_v10, 0.0 }
  0xd3   :  { %1063 = vmatpush.bf16.msrb.mxu0 %v4268_v24  ;;  %1076 = vmatpush.bf16.msrb.mxu1 %v4276_v33  ;;  %v3388_v24 = vld [vmem:[#allocation15 + $0xd0] sm:$0xf0] }
  0xd4   :  { %v428_v13 = vpack.c.bf16 %v424_v11, %v424_v11  ;;  %v429_v14 = vpack.c.bf16 %v425_v12, %v425_v12 }
  0xd6   :  { %854 = vmatmul.bf16.vlgmr.msrb.gmra.mxu2 %v428_v13  ;;  %880 = vmatmul.bf16.vlgmr.msra.gmra.mxu0 %v426_v61 }
  0xd7   :  { %867 = vmatmul.bf16.vlgmr.msrb.gmra.mxu3 %v429_v14  ;;  %893 = vmatmul.bf16.vlgmr.msra.gmra.mxu1 %v427_v62  ;;  %v341_v15 = vpop.f32.mrf.mxu2  ;;  %v354_v16 = vpop.f32.mrf.mxu3 }
  0xd8   :  { %1064 = vmatpush.bf16.msrb.mxu0 %v4267_v26  ;;  %1077 = vmatpush.bf16.msrb.mxu1 %v4275_v25  ;;  %v3394_v26 = vld [vmem:[#allocation15 + $0xc8] sm:$0xf]  ;;  %v4302_v25 = vld [vmem:[#allocation15 + $0xac] sm:$0xf0] }
  0xd9   :  { %1280 = vmatpush.bf16.msrb.mxu2 %v3403_v47  ;;  %1293 = vmatpush.bf16.msrb.mxu3 %v3407_v53  ;;  %v3395_v29 = vor.u32 %v4307_v27, %v3394_v26  ;;  %v3355_v47 = vor.u32 %v4298_v45, %v3354_v44  ;;  %v4297_v53 = vld [vmem:[#allocation15 + $0x8c] sm:$0xf]  ;;  %v3314_v26 = vld [vmem:[#allocation15 + $0x28] sm:$0xf]  ;;  %v4287_v27 = vld [vmem:[#allocation15 + $0x34] sm:$0xf0] }
  0xda   :  { %v3786_v44 = vld [vmem:[#allocation17 + $0x2e0] sm:$0xf]  ;;  %v4406_v45 = vld [vmem:[#allocation17 + $0x2ec] sm:$0xf0] }
  0xdc   :  { %1065 = vmatpush.bf16.msrb.mxu0 %v4266_v28  ;;  %1078 = vmatpush.bf16.msrb.mxu1 %v4274_v36  ;;  %v3391_v28 = vor.u32 %v4304_v22, %v3388_v24  ;;  %v4284_v22 = vld [vmem:[#allocation15 + $0x24] sm:$0xf]  ;;  %v3308_v24 = vld [vmem:[#allocation15 + $0x30] sm:$0xf0] }
  0xde   :  { %1294 = vmatpush.bf16.msrb.mxu3 %v3391_v28  ;;  %v3311_v28 = vor.u32 %v4284_v22, %v3308_v24  ;;  %v4366_v22 = vld [vmem:[#allocation17 + $0x1ac] sm:$0xf0] }
  0xdf   :  { %v4974_v17 = vpop.f32.mrf.mxu2  ;;  %v4976_v18 = vpop.f32.mrf.mxu3 }
  0xe0   :  { %1066 = vmatpush.bf16.msrb.mxu0 %v4265_v30  ;;  %1079 = vmatpush.bf16.msrb.mxu1 %v4273_v37  ;;  %v4305_v30 = vld [vmem:[#allocation15 + $0xcc] sm:$0xf] }
  0xe1   :  { %v3399_v33 = vor.u32 %v4305_v30, %v3396_v31  ;;  %v4285_v30 = vld [vmem:[#allocation15 + $0x2c] sm:$0xf]  ;;  %v3316_v31 = vld [vmem:[#allocation15 + $0x38] sm:$0xf0] }
  0xe4   :  { %1067 = vmatpush.bf16.msrb.mxu0 %v4264_v32  ;;  %1080 = vmatpush.bf16.msrb.mxu1 %v4272_v41  ;;  %v3370_v32 = vld [vmem:[#allocation15 + $0xa0] sm:$0xf] }
  0xe5   :  { %v3371_v36 = vor.u32 %v4302_v25, %v3370_v32  ;;  %v3319_v32 = vor.u32 %v4285_v30, %v3316_v31  ;;  %v4282_v25 = vld [vmem:[#allocation15 + $0xc] sm:$0xf0]  ;;  %v3610_v30 = vld [vmem:[#allocation17 + $0x180] sm:$0xf] }
  0xe6   :  { %906 = vmatmul.bf16.vlgmr.msra.gmra.mxu2 %v428_v13  ;;  %v4362_v31 = vld [vmem:[#allocation17 + $0x18c] sm:$0xf0] }
  0xe7   :  { %919 = vmatmul.bf16.vlgmr.msra.gmra.mxu3 %v429_v14  ;;  %v393_v19 = vpop.f32.mrf.mxu2  ;;  %v406_v20 = vpop.f32.mrf.mxu3 }
  0xe8   :  { %1306 = vmatpush.bf16.msra.mxu0 %v3411_v54  ;;  %1319 = vmatpush.bf16.msra.mxu1 %v3415_v57  ;;  %v3386_v20 = vld [vmem:[#allocation15 + $0xc0] sm:$0xf]  ;;  %v3364_v54 = vld [vmem:[#allocation15 + $0x98] sm:$0xf0]  ;;  %v4294_v57 = vld [vmem:[#allocation15 + $0x6c] sm:$0xf0] }
  0xe9   :  { %v3387_v23 = vor.u32 %v4306_v21, %v3386_v20  ;;  %v3367_v56 = vor.u32 %v4297_v53, %v3364_v54  ;;  %v3306_v20 = vld [vmem:[#allocation15 + $0x20] sm:$0xf]  ;;  %v4286_v21 = vld [vmem:[#allocation15 + $0x2c] sm:$0xf0] }
  0xea   :  { %v4434_v53 = vld [vmem:[#allocation17 + $0x3cc] sm:$0xf0]  ;;  %v3530_v54 = vld [vmem:[#allocation17 + $0xe0] sm:$0xf] }
  0xeb   :  { %1281 = vmatpush.bf16.msrb.mxu2 %v3387_v23  ;;  %v3307_v23 = vor.u32 %v4286_v21, %v3306_v20  ;;  %v3866_v20 = vld [vmem:[#allocation17 + $0x380] sm:$0xf]  ;;  %v4426_v21 = vld [vmem:[#allocation17 + $0x38c] sm:$0xf0] }
  0xec   :  { %1307 = vmatpush.bf16.msra.mxu0 %v3395_v29  ;;  %1320 = vmatpush.bf16.msra.mxu1 %v3399_v33  ;;  %v3315_v29 = vor.u32 %v4287_v27, %v3314_v26  ;;  %v3290_v33 = vld [vmem:[#allocation15] sm:$0xf] }
  0xed   :  { %v3482_v26 = vld [vmem:[#allocation17 + $0x80] sm:$0xf] }
  0xef   :  { %1282 = vmatpush.bf16.msrb.mxu2 %v3371_v36  ;;  %v3292_v36 = vld [vmem:[#allocation15 + $0x10] sm:$0xf0] }
  0xf3   :  { %1283 = vmatpush.bf16.msrb.mxu2 %v3355_v47  ;;  %v3787_v47 = vor.u32 %v4406_v45, %v3786_v44  ;;  %v3706_v45 = vld [vmem:[#allocation17 + $0x240] sm:$0xf] }
 0x143   :  { %v829_v34 = vpop.f32.mrf.mxu0  ;;  %v842_v35 = vpop.f32.mrf.mxu1 }
 0x144   :  { %v830_v51 = vadd.f32 %v829_v34, %v496_v42  ;;  %v4300_v34 = vld [vmem:[#allocation15 + $0xa4] sm:$0xf]  ;;  %v3380_v42 = vld [vmem:[#allocation15 + $0xb8] sm:$0xf0] }
 0x145   :  { %v3383_v43 = vor.u32 %v4301_v40, %v3380_v42  ;;  %v3300_v42 = vld [vmem:[#allocation15 + $0x18] sm:$0xf0] }
 0x146   :  { %v843_v58 = vadd.f32 %v842_v35, %v830_v51  ;;  %v3372_v35 = vld [vmem:[#allocation15 + $0xb0] sm:$0xf0] }
 0x147   :  { %v3375_v37 = vor.u32 %v4300_v34, %v3372_v35  ;;  %1321 = vmatpush.bf16.msra.mxu1 %v3383_v43  ;;  %v4280_v34 = vld [vmem:[#allocation15 + $0x4] sm:$0xf]  ;;  %v3291_v35 = vor.u32 %v4282_v25, %v3290_v33  ;;  %v3722_v33 = vld [vmem:[#allocation17 + $0x260] sm:$0xf]  ;;  %v4390_v25 = vld [vmem:[#allocation17 + $0x26c] sm:$0xf0] }
 0x149   :  { %1295 = vmatpush.bf16.msrb.mxu3 %v3375_v37  ;;  %v3298_v37 = vld [vmem:[#allocation15 + $0x8] sm:$0xf] }
 0x14b   :  { %v831_v38 = vpop.f32.mrf.mxu0  ;;  %v844_v39 = vpop.f32.mrf.mxu1  ;;  %1322 = vmatpush.bf16.msra.mxu1 %v3367_v56 }
 0x14c   :  { %v3378_v38 = vld [vmem:[#allocation15 + $0xa8] sm:$0xf]  ;;  %v4303_v39 = vld [vmem:[#allocation15 + $0xb4] sm:$0xf0] }
 0x14d   :  { %v3379_v41 = vor.u32 %v4303_v39, %v3378_v38  ;;  %v4283_v38 = vld [vmem:[#allocation15 + $0x14] sm:$0xf0]  ;;  %v3295_v39 = vor.u32 %v4280_v34, %v3292_v36  ;;  %v3850_v34 = vld [vmem:[#allocation17 + $0x360] sm:$0xf]  ;;  %v4525_v36 = vld [vmem:[#allocation14] ss:$0 sm:$0xff] }
 0x14e   :  { %v3299_v40 = vor.u32 %v4283_v38, %v3298_v37  ;;  %v3611_v38 = vor.u32 %v4362_v31, %v3610_v30 }
 0x14f   :  { %1308 = vmatpush.bf16.msra.mxu0 %v3379_v41  ;;  %v4281_v41 = vld [vmem:[#allocation15 + $0xc] sm:$0xf] }
 0x150   :  { %v3303_v43 = vor.u32 %v4281_v41, %v3300_v42  ;;  %v4326_v41 = vld [vmem:[#allocation17 + $0x6c] sm:$0xf0]  ;;  %v3594_v42 = vld [vmem:[#allocation17 + $0x160] sm:$0xf] }
 0x153   :  { %v881_v46 = vpop.f32.mrf.mxu0 }
 0x154   :  { %v894_v52 = vpop.f32.mrf.mxu1  ;;  %v882_v8 = vadd.f32 %v881_v46, %v497_v4  ;;  %v4296_v46 = vld [vmem:[#allocation15 + $0x84] sm:$0xf]  ;;  %v3348_v4 = vld [vmem:[#allocation15 + $0x78] sm:$0xf0] }
 0x155   :  { %v3359_v51 = vor.u32 %v4296_v46, %v3356_v48  ;;  %v3914_v46 = vld [vmem:[#allocation17 + $0x3e0] sm:$0xf]  ;;  %v4438_v48 = vld [vmem:[#allocation17 + $0x3ec] sm:$0xf0] }
 0x156   :  { %v895_v9 = vadd.f32 %v894_v52, %v882_v8  ;;  %v3363_v52 = vor.u32 %v4299_v50, %v3362_v49  ;;  %v4288_v8 = vld [vmem:[#allocation15 + $0x44] sm:$0xf]  ;;  %v3770_v49 = vld [vmem:[#allocation17 + $0x2c0] sm:$0xf]  ;;  %v4402_v50 = vld [vmem:[#allocation17 + $0x2cc] sm:$0xf0] }
 0x157   :  { %1296 = vmatpush.bf16.msrb.mxu3 %v3359_v51  ;;  %v3915_v51 = vor.u32 %v4438_v48, %v3914_v46  ;;  %v3771_v56 = vor.u32 %v4402_v50, %v3770_v49  ;;  %v4386_v46 = vld [vmem:[#allocation17 + $0x24c] sm:$0xf0] }
 0x158   :  { %1309 = vmatpush.bf16.msra.mxu0 %v3363_v52  ;;  %v3898_v52 = vld [vmem:[#allocation17 + $0x3c0] sm:$0xf]  ;;  %v4418_v48 = vld [vmem:[#allocation17 + $0x34c] sm:$0xf0] }
 0x159   :  { %v855_v59 = vpop.f32.mrf.mxu2 }
 0x15a   :  { %v856_v60 = vadd.f32 %v855_v59, %v843_v58  ;;  %v868_v61 = vpop.f32.mrf.mxu3  ;;  %v4292_v58 = vld [vmem:[#allocation15 + $0x64] sm:$0xf]  ;;  %v3340_v59 = vld [vmem:[#allocation15 + $0x70] sm:$0xf0] }
 0x15b   :  { %v883_v62 = vpop.f32.mrf.mxu0 }
 0x15c   :  { %v869_v63 = vadd.f32 %v868_v61, %v856_v60  ;;  %v896_v1 = vpop.f32.mrf.mxu1  ;;  %v3339_v60 = vor.u32 %v4294_v57, %v3338_v55  ;;  %v3343_v61 = vor.u32 %v4292_v58, %v3340_v59  ;;  %v3346_v62 = vld [vmem:[#allocation15 + $0x68] sm:$0xf]  ;;  %v4342_v57 = vld [vmem:[#allocation17 + $0xec] sm:$0xf0]  ;;  %v3658_v58 = vld [vmem:[#allocation17 + $0x1e0] sm:$0xf] }
 0x15d   :  { %v4293_v1 = vld [vmem:[#allocation15 + $0x6c] sm:$0xf]  ;;  %v4374_v59 = vld [vmem:[#allocation17 + $0x1ec] sm:$0xf0] }
 0x15e   :  { %v924_v3 = vmax.f32 %v869_v63, 0.0  ;;  %v4295_v63 = vld [vmem:[#allocation15 + $0x74] sm:$0xf0]  ;;  %1284 = vmatpush.bf16.msrb.mxu2 %v3339_v60  ;;  %1297 = vmatpush.bf16.msrb.mxu3 %v3343_v61  ;;  %v3899_v60 = vor.u32 %v4434_v53, %v3898_v52  ;;  %v3531_v61 = vor.u32 %v4342_v57, %v3530_v54  ;;  %v3450_v52 = vld [vmem:[#allocation17 + $0x40] sm:$0xf]  ;;  %v3707_v54 = vor.u32 %v4386_v46, %v3706_v45 }
 0x15f   :  { %v3578_v57 = vld [vmem:[#allocation17 + $0x140] sm:$0xf]  ;;  %v4336_v45 = vld [vmem:[#allocation17 + $0xc4] sm:$0xf]  ;;  %v3516_v46 = vld [vmem:[#allocation17 + $0xd0] sm:$0xf0] }
 0x160   :  { %v926_v5 = vpack.c.bf16 %v924_v3, %v924_v3  ;;  %v3347_v3 = vor.u32 %v4295_v63, %v3346_v62  ;;  %v3659_v62 = vor.u32 %v4374_v59, %v3658_v58  ;;  %v3754_v63 = vld [vmem:[#allocation17 + $0x2a0] sm:$0xf]  ;;  %v4354_v58 = vld [vmem:[#allocation17 + $0x14c] sm:$0xf0] }
 0x161   :  { %v857_v6 = vpop.f32.mrf.mxu2 }
 0x162   :  { %v870_v7 = vpop.f32.mrf.mxu3  ;;  %1068 = vmatmul.bf16.vlgmr.msrb.gmra.mxu0 %v926_v5  ;;  %v3351_v5 = vor.u32 %v4293_v1, %v3348_v4  ;;  %v3322_v6 = vld [vmem:[#allocation15 + $0x40] sm:$0xf]  ;;  %v4398_v1 = vld [vmem:[#allocation17 + $0x2ac] sm:$0xf0] }
 0x163   :  { %1310 = vmatpush.bf16.msra.mxu0 %v3347_v3  ;;  %v4290_v7 = vld [vmem:[#allocation15 + $0x4c] sm:$0xf0]  ;;  %v3882_v3 = vld [vmem:[#allocation17 + $0x3a0] sm:$0xf] }
 0x164   :  { %1323 = vmatpush.bf16.msra.mxu1 %v3351_v5  ;;  %v4430_v4 = vld [vmem:[#allocation17 + $0x3ac] sm:$0xf0]  ;;  %v3514_v5 = vld [vmem:[#allocation17 + $0xc0] sm:$0xf] }
 0x169   :  { %v907_v10 = vpop.f32.mrf.mxu2 }
 0x16a   :  { %v908_v11 = vadd.f32 %v907_v10, %v895_v9  ;;  %v920_v12 = vpop.f32.mrf.mxu3  ;;  %v3323_v9 = vor.u32 %v4290_v7, %v3322_v6  ;;  %v3324_v10 = vld [vmem:[#allocation15 + $0x50] sm:$0xf0]  ;;  %v4338_v6 = vld [vmem:[#allocation17 + $0xcc] sm:$0xf0] }
 0x16b   :  { %v3515_v7 = vor.u32 %v4338_v6, %v3514_v5  ;;  %v4318_v6 = vld [vmem:[#allocation17 + $0x2c] sm:$0xf0] }
 0x16c   :  { %v921_v13 = vadd.f32 %v920_v12, %v908_v11  ;;  %v3330_v11 = vld [vmem:[#allocation15 + $0x48] sm:$0xf]  ;;  %v4291_v12 = vld [vmem:[#allocation15 + $0x54] sm:$0xf0]  ;;  %1285 = vmatpush.bf16.msrb.mxu2 %v3323_v9  ;;  %v4370_v9 = vld [vmem:[#allocation17 + $0x1cc] sm:$0xf0] }
 0x16e   :  { %v925_v14 = vmax.f32 %v921_v13, 0.0  ;;  %v3327_v13 = vor.u32 %v4288_v8, %v3324_v10  ;;  %v3642_v8 = vld [vmem:[#allocation17 + $0x1c0] sm:$0xf]  ;;  %v3755_v10 = vor.u32 %v4398_v1, %v3754_v63  ;;  %v4414_v1 = vld [vmem:[#allocation17 + $0x32c] sm:$0xf0] }
 0x16f   :  { %v3818_v63 = vld [vmem:[#allocation17 + $0x320] sm:$0xf] }
 0x170   :  { %v927_v15 = vpack.c.bf16 %v925_v14, %v925_v14  ;;  %v3331_v14 = vor.u32 %v4291_v12, %v3330_v11  ;;  %1298 = vmatpush.bf16.msrb.mxu3 %v3327_v13  ;;  %1286 = vmatpush.bf16.msrb.mxu2 %v3307_v23  ;;  %v3643_v11 = vor.u32 %v4370_v9, %v3642_v8  ;;  %v3738_v12 = vld [vmem:[#allocation17 + $0x280] sm:$0xf]  ;;  %v4394_v13 = vld [vmem:[#allocation17 + $0x28c] sm:$0xf0] }
 0x171   :  { %v909_v16 = vpop.f32.mrf.mxu2  ;;  %v4350_v8 = vld [vmem:[#allocation17 + $0x12c] sm:$0xf0]  ;;  %v3819_v9 = vor.u32 %v4414_v1, %v3818_v63  ;;  %v4392_v1 = vld [vmem:[#allocation17 + $0x284] sm:$0xf] }
 0x172   :  { %v922_v19 = vpop.f32.mrf.mxu3  ;;  %1081 = vmatmul.bf16.vlgmr.msrb.gmra.mxu1 %v927_v15  ;;  %v4289_v15 = vld [vmem:[#allocation15 + $0x4c] sm:$0xf]  ;;  %v3332_v16 = vld [vmem:[#allocation15 + $0x58] sm:$0xf0]  ;;  %1311 = vmatpush.bf16.msra.mxu0 %v3331_v14  ;;  %v3883_v14 = vor.u32 %v4430_v4, %v3882_v3  ;;  %v3579_v3 = vor.u32 %v4354_v58, %v3578_v57  ;;  %v3434_v4 = vld [vmem:[#allocation17 + $0x20] sm:$0xf] }
 0x173   :  { %v3335_v19 = vor.u32 %v4289_v15, %v3332_v16  ;;  %v3498_v15 = vld [vmem:[#allocation17 + $0xa0] sm:$0xf]  ;;  %v4334_v16 = vld [vmem:[#allocation17 + $0xac] sm:$0xf0]  ;;  %v4332_v58 = vld [vmem:[#allocation17 + $0xa4] sm:$0xf] }
 0x174   :  { %1299 = vmatpush.bf16.msrb.mxu3 %v3311_v28  ;;  %1287 = vmatpush.bf16.msrb.mxu2 %v3291_v35  ;;  %v3499_v23 = vor.u32 %v4334_v16, %v3498_v15  ;;  %v3739_v28 = vor.u32 %v4394_v13, %v3738_v12  ;;  %v4422_v35 = vld [vmem:[#allocation17 + $0x36c] sm:$0xf0]  ;;  %v3802_v12 = vld [vmem:[#allocation17 + $0x300] sm:$0xf]  ;;  %v3788_v15 = vld [vmem:[#allocation17 + $0x2f0] sm:$0xf0] }
 0x175   :  { %1324 = vmatpush.bf16.msra.mxu1 %v3335_v19  ;;  %v3626_v19 = vld [vmem:[#allocation17 + $0x1a0] sm:$0xf]  ;;  %v3851_v44 = vor.u32 %v4422_v35, %v3850_v34  ;;  %v4410_v13 = vld [vmem:[#allocation17 + $0x30c] sm:$0xf0]  ;;  %v4436_v16 = vld [vmem:[#allocation17 + $0x3e4] sm:$0xf] }
 0x176   :  { %1312 = vmatpush.bf16.msra.mxu0 %v3315_v29  ;;  %v3627_v24 = vor.u32 %v4366_v22, %v3626_v19  ;;  %v4330_v29 = vld [vmem:[#allocation17 + $0x8c] sm:$0xf0]  ;;  %v3435_v19 = vor.u32 %v4318_v6, %v3434_v4  ;;  %v3916_v22 = vld [vmem:[#allocation17 + $0x3f0] sm:$0xf0] }
 0x177   :  { %v3483_v37 = vor.u32 %v4330_v29, %v3482_v26  ;;  %v4340_v29 = vld [vmem:[#allocation17 + $0xe4] sm:$0xf]  ;;  %v3660_v34 = vld [vmem:[#allocation17 + $0x1f0] sm:$0xf0] }
 0x178   :  { %1300 = vmatpush.bf16.msrb.mxu3 %v3295_v39  ;;  %2136 = vmatpush.bf16.msra.mxu2 %v3531_v61  ;;  %v3466_v39 = vld [vmem:[#allocation17 + $0x60] sm:$0xf]  ;;  %v3868_v4 = vld [vmem:[#allocation17 + $0x390] sm:$0xf0] }
 0x179   :  { %1325 = vmatpush.bf16.msra.mxu1 %v3319_v32  ;;  %v3867_v32 = vor.u32 %v4426_v21, %v3866_v20  ;;  %v3467_v50 = vor.u32 %v4326_v41, %v3466_v39  ;;  %v3690_v61 = vld [vmem:[#allocation17 + $0x220] sm:$0xf]  ;;  %v4432_v39 = vld [vmem:[#allocation17 + $0x3c4] sm:$0xf] }
 0x17a   :  { %1313 = vmatpush.bf16.msra.mxu0 %v3299_v40  ;;  %v3723_v40 = vor.u32 %v4390_v25, %v3722_v33  ;;  %v3532_v33 = vld [vmem:[#allocation17 + $0xf0] sm:$0xf0]  ;;  %v4372_v25 = vld [vmem:[#allocation17 + $0x1e4] sm:$0xf] }
 0x17c   :  { %2149 = vmatpush.bf16.msra.mxu3 %v3659_v62  ;;  %2137 = vmatpush.bf16.msra.mxu2 %v3515_v7  ;;  %v4382_v62 = vld [vmem:[#allocation17 + $0x22c] sm:$0xf0]  ;;  %v3562_v7 = vld [vmem:[#allocation17 + $0x120] sm:$0xf] }
 0x17d   :  { %1326 = vmatpush.bf16.msra.mxu1 %v3303_v43  ;;  %v4358_v43 = vld [vmem:[#allocation17 + $0x16c] sm:$0xf0]  ;;  %v3691_v5 = vor.u32 %v4382_v62, %v3690_v61  ;;  %v3563_v20 = vor.u32 %v4350_v8, %v3562_v7  ;;  %v3628_v61 = vld [vmem:[#allocation17 + $0x1b0] sm:$0xf0]  ;;  %v4328_v7 = vld [vmem:[#allocation17 + $0x84] sm:$0xf] }
 0x17e   :  { %2162 = vmatpush.bf16.msrb.mxu0 %v3787_v47  ;;  %v3834_v47 = vld [vmem:[#allocation17 + $0x340] sm:$0xf]  ;;  %v3484_v8 = vld [vmem:[#allocation17 + $0x90] sm:$0xf0] }
 0x180   :  { %2150 = vmatpush.bf16.msra.mxu3 %v3643_v11  ;;  %2138 = vmatpush.bf16.msra.mxu2 %v3499_v23  ;;  %v4378_v11 = vld [vmem:[#allocation17 + $0x20c] sm:$0xf0]  ;;  %v3418_v23 = vld [vmem:[#allocation17] sm:$0xf] }
 0x181   :  { %2175 = vmatpush.bf16.msrb.mxu1 %v3915_v51  ;;  %v3595_v51 = vor.u32 %v4358_v43, %v3594_v42  ;;  %v3535_v43 = vor.u32 %v4340_v29, %v3532_v33  ;;  %v3836_v29 = vld [vmem:[#allocation17 + $0x350] sm:$0xf0]  ;;  %v4356_v33 = vld [vmem:[#allocation17 + $0x164] sm:$0xf] }
 0x182   :  { %2163 = vmatpush.bf16.msrb.mxu0 %v3771_v56  ;;  %v4322_v56 = vld [vmem:[#allocation17 + $0x4c] sm:$0xf0] }
 0x184   :  { %2151 = vmatpush.bf16.msra.mxu3 %v3627_v24  ;;  %2139 = vmatpush.bf16.msra.mxu2 %v3483_v37  ;;  %v4314_v24 = vld [vmem:[#allocation17 + $0xc] sm:$0xf0]  ;;  %v4400_v37 = vld [vmem:[#allocation17 + $0x2c4] sm:$0xf] }
 0x185   :  { %2176 = vmatpush.bf16.msrb.mxu1 %v3899_v60  ;;  %v3835_v60 = vor.u32 %v4418_v48, %v3834_v47  ;;  %v3419_v41 = vor.u32 %v4314_v24, %v3418_v23  ;;  %v4368_v47 = vld [vmem:[#allocation17 + $0x1c4] sm:$0xf]  ;;  %v3644_v48 = vld [vmem:[#allocation17 + $0x1d0] sm:$0xf0] }
 0x186   :  { %2164 = vmatpush.bf16.msrb.mxu0 %v3755_v10  ;;  %v3674_v10 = vld [vmem:[#allocation17 + $0x200] sm:$0xf]  ;;  %v3647_v57 = vor.u32 %v4368_v47, %v3644_v48  ;;  %v4384_v23 = vld [vmem:[#allocation17 + $0x244] sm:$0xf]  ;;  %v3708_v24 = vld [vmem:[#allocation17 + $0x250] sm:$0xf0] }
 0x187   :  { %v3675_v31 = vor.u32 %v4378_v11, %v3674_v10  ;;  %v3612_v10 = vld [vmem:[#allocation17 + $0x190] sm:$0xf0]  ;;  %v4376_v48 = vld [vmem:[#allocation17 + $0x204] sm:$0xf] }
 0x188   :  { %2152 = vmatpush.bf16.msra.mxu3 %v3611_v38  ;;  %2140 = vmatpush.bf16.msra.mxu2 %v3467_v50  ;;  %v3772_v38 = vld [vmem:[#allocation17 + $0x2d0] sm:$0xf0] }
 0x189   :  { %2177 = vmatpush.bf16.msrb.mxu1 %v3883_v14  ;;  %v4404_v14 = vld [vmem:[#allocation17 + $0x2e4] sm:$0xf] }
 0x18a   :  { %2165 = vmatpush.bf16.msrb.mxu0 %v3739_v28  ;;  %v4346_v28 = vld [vmem:[#allocation17 + $0x10c] sm:$0xf0]  ;;  %v3791_v35 = vor.u32 %v4404_v14, %v3788_v15  ;;  %v3724_v14 = vld [vmem:[#allocation17 + $0x270] sm:$0xf0]  ;;  %v4420_v15 = vld [vmem:[#allocation17 + $0x364] sm:$0xf] }
 0x18c   :  { %2153 = vmatpush.bf16.msra.mxu3 %v3595_v51  ;;  %v4396_v51 = vld [vmem:[#allocation17 + $0x2a4] sm:$0xf] }
 0x18d   :  { %2178 = vmatpush.bf16.msrb.mxu1 %v3867_v32  ;;  %v3803_v32 = vor.u32 %v4410_v13, %v3802_v12  ;;  %v4388_v13 = vld [vmem:[#allocation17 + $0x264] sm:$0xf] }
 0x18e   :  { %2166 = vmatpush.bf16.msrb.mxu0 %v3723_v40  ;;  %v3900_v40 = vld [vmem:[#allocation17 + $0x3d0] sm:$0xf0] }
 0x18f   :  { %v3903_v50 = vor.u32 %v4432_v39, %v3900_v40  ;;  %v4412_v39 = vld [vmem:[#allocation17 + $0x324] sm:$0xf]  ;;  %v3820_v40 = vld [vmem:[#allocation17 + $0x330] sm:$0xf0] }
 0x190   :  { %2154 = vmatpush.bf16.msra.mxu3 %v3579_v3  ;;  %v4424_v3 = vld [vmem:[#allocation17 + $0x384] sm:$0xf] }
 0x191   :  { %2179 = vmatpush.bf16.msrb.mxu1 %v3851_v44  ;;  %v3663_v44 = vor.u32 %v4372_v25, %v3660_v34  ;;  %v3871_v12 = vor.u32 %v4424_v3, %v3868_v4  ;;  %v3596_v34 = vld [vmem:[#allocation17 + $0x170] sm:$0xf0]  ;;  %v1336_v4 = vld [vmem:[%s5050_s3] sm:$0xf] }
 0x192   :  { %2167 = vmatpush.bf16.msrb.mxu0 %v3707_v54  ;;  %v3884_v54 = vld [vmem:[#allocation17 + $0x3b0] sm:$0xf0] }
 0x194   :  { %2155 = vmatpush.bf16.msra.mxu3 %v3563_v20 }
 0x195   :  { %2180 = vmatpush.bf16.msrb.mxu1 %v3835_v60  ;;  %v4364_v60 = vld [vmem:[#allocation17 + $0x1a4] sm:$0xf] }
 0x196   :  { %2168 = vmatpush.bf16.msrb.mxu0 %v3691_v5  ;;  %v3631_v6 = vor.u32 %v4364_v60, %v3628_v61  ;;  %v4312_v61 = vld [vmem:[#allocation17 + $0x4] sm:$0xf] }
 0x199   :  { %2181 = vmatpush.bf16.msrb.mxu1 %v3819_v9  ;;  %v4360_v9 = vld [vmem:[#allocation17 + $0x184] sm:$0xf] }
 0x19a   :  { %2169 = vmatpush.bf16.msrb.mxu0 %v3675_v31  ;;  %v3615_v20 = vor.u32 %v4360_v9, %v3612_v10  ;;  %v4324_v31 = vld [vmem:[#allocation17 + $0x64] sm:$0xf] }
 0x19d   :  { %2182 = vmatpush.bf16.msrb.mxu1 %v3803_v32  ;;  %v3468_v32 = vld [vmem:[#allocation17 + $0x70] sm:$0xf0] }
 0x19e   :  { %v3471_v25 = vor.u32 %v4324_v31, %v3468_v32  ;;  %v4403_v32 = vld [vmem:[#allocation17 + $0x2d4] sm:$0xf0] }
 0x1df   :  { %v4978_v55 = vpop.f32.mrf.mxu0 }
 0x1e0   :  { %v1070_v49 = vadd.f32 %v4525_v36, %v4978_v55  ;;  %v3451_v55 = vor.u32 %v4322_v56, %v3450_v52  ;;  %v3919_v36 = vor.u32 %v4436_v16, %v3916_v22  ;;  %v3756_v52 = vld [vmem:[#allocation17 + $0x2b0] sm:$0xf0]  ;;  %v3519_v56 = vor.u32 %v4336_v45, %v3516_v46 }
 0x1e1   :  { %v3759_v62 = vor.u32 %v4396_v51, %v3756_v52  ;;  %v3852_v16 = vld [vmem:[#allocation17 + $0x370] sm:$0xf0] }
 0x1e2   :  { %2141 = vmatpush.bf16.msra.mxu2 %v3451_v55  ;;  %v3740_v55 = vld [vmem:[#allocation17 + $0x290] sm:$0xf0]  ;;  %v3855_v22 = vor.u32 %v4420_v15, %v3852_v16  ;;  %v3922_v15 = vld [vmem:[#allocation17 + $0x3e8] sm:$0xf]  ;;  %v4439_v16 = vld [vmem:[#allocation17 + $0x3f4] sm:$0xf0] }
 0x1e3   :  { %v3743_v11 = vor.u32 %v4392_v1, %v3740_v55  ;;  %v3580_v46 = vld [vmem:[#allocation17 + $0x150] sm:$0xf0]  ;;  %v4344_v1 = vld [vmem:[#allocation17 + $0x104] sm:$0xf] }
 0x1e4   :  { %v3804_v52 = vld [vmem:[#allocation17 + $0x310] sm:$0xf0] }
 0x1e5   :  { %v3548_v55 = vld [vmem:[#allocation17 + $0x110] sm:$0xf0] }
 0x1e6   :  { %2142 = vmatpush.bf16.msra.mxu2 %v3435_v19  ;;  %v3487_v19 = vor.u32 %v4328_v7, %v3484_v8  ;;  %v3551_v3 = vor.u32 %v4344_v1, %v3548_v55  ;;  %v4427_v1 = vld [vmem:[#allocation17 + $0x394] sm:$0xf0] }
 0x1e7   :  { %v1071_v27 = vpop.f32.mrf.mxu0 }
 0x1e8   :  { %v3546_v27 = vld [vmem:[#allocation17 + $0x100] sm:$0xf] }
 0x1e9   :  { %v3547_v42 = vor.u32 %v4346_v28, %v3546_v27  ;;  %v4416_v27 = vld [vmem:[#allocation17 + $0x344] sm:$0xf]  ;;  %v3711_v28 = vor.u32 %v4384_v23, %v3708_v24 }
 0x1ea   :  { %2143 = vmatpush.bf16.msra.mxu2 %v3419_v41  ;;  %v3823_v41 = vor.u32 %v4412_v39, %v3820_v40  ;;  %v4375_v39 = vld [vmem:[#allocation17 + $0x1f4] sm:$0xf0] }
 0x1eb   :  { %2156 = vmatpush.bf16.msra.mxu3 %v3547_v42  ;;  %v4320_v42 = vld [vmem:[#allocation17 + $0x44] sm:$0xf] }
 0x1ef   :  { %v1082_v53 = vpop.f32.mrf.mxu1 }
 0x1f0   :  { %v1083_v59 = vadd.f32 %v1082_v53, %v1070_v49  ;;  %v3775_v49 = vor.u32 %v4400_v37, %v3772_v38  ;;  %v4428_v53 = vld [vmem:[#allocation17 + $0x3a4] sm:$0xf]  ;;  %v3692_v37 = vld [vmem:[#allocation17 + $0x230] sm:$0xf0] }
 0x1f1   :  { %v3887_v63 = vor.u32 %v4428_v53, %v3884_v54  ;;  %v4316_v54 = vld [vmem:[#allocation17 + $0x24] sm:$0xf] }
 0x1f2   :  { %4527 = vtanh.f32 %v1083_v59  ;;  %v3500_v59 = vld [vmem:[#allocation17 + $0xb0] sm:$0xf0] }
 0x1f3   :  { %v3503_v5 = vor.u32 %v4332_v58, %v3500_v59  ;;  %v3564_v59 = vld [vmem:[#allocation17 + $0x130] sm:$0xf0] }
 0x1f7   :  { %v1084_v21 = vpop.f32.mrf.mxu1 }
 0x1f8   :  { %v4981_v26 = vpop.eup %4527  ;;  %v3727_v21 = vor.u32 %v4388_v13, %v3724_v14  ;;  %v4407_v14 = vld [vmem:[#allocation17 + $0x2f4] sm:$0xf0] }
 0x1f9   :  { %v1087_v30 = vpack.c.bf16 %v4981_v26, %v4981_v26 }
 0x1fb   :  { %1288 = vmatmul.bf16.vlgmr.msrb.gmra.mxu2 %v1087_v30  ;;  %1301 = vmatmul.bf16.vlgmr.msrb.gmra.mxu3 %v1087_v30 }
 0x1fc   :  { %1314 = vmatmul.bf16.vlgmr.msra.gmra.mxu0 %v1087_v30  ;;  %1327 = vmatmul.bf16.vlgmr.msra.gmra.mxu1 %v1087_v30  ;;  %v3839_v30 = vor.u32 %v4416_v27, %v3836_v29 }
 0x1fd   :  { %2214 = vmatpush.bf16.msra.mxu0 %v3791_v35  ;;  %2227 = vmatpush.bf16.msra.mxu1 %v3919_v36  ;;  %v3599_v35 = vor.u32 %v4356_v33, %v3596_v34  ;;  %v4380_v36 = vld [vmem:[#allocation17 + $0x224] sm:$0xf]  ;;  %v3906_v33 = vld [vmem:[#allocation17 + $0x3c8] sm:$0xf] }
 0x1fe   :  { %2188 = vmatpush.bf16.msrb.mxu2 %v3535_v43  ;;  %2201 = vmatpush.bf16.msrb.mxu3 %v3663_v44  ;;  %v3695_v38 = vor.u32 %v4380_v36, %v3692_v37  ;;  %v3452_v43 = vld [vmem:[#allocation17 + $0x50] sm:$0xf0]  ;;  %v4352_v44 = vld [vmem:[#allocation17 + $0x144] sm:$0xf] }
 0x1ff   :  { %v3455_v45 = vor.u32 %v4320_v42, %v3452_v43  ;;  %v3583_v47 = vor.u32 %v4352_v44, %v3580_v46  ;;  %v3762_v44 = vld [vmem:[#allocation17 + $0x2a8] sm:$0xf] }
 0x200   :  { %v3890_v46 = vld [vmem:[#allocation17 + $0x3a8] sm:$0xf] }
 0x201   :  { %2215 = vmatpush.bf16.msra.mxu0 %v3775_v49  ;;  %2228 = vmatpush.bf16.msra.mxu1 %v3903_v50  ;;  %v3676_v49 = vld [vmem:[#allocation17 + $0x210] sm:$0xf0]  ;;  %v4408_v50 = vld [vmem:[#allocation17 + $0x304] sm:$0xf] }
 0x202   :  { %2189 = vmatpush.bf16.msrb.mxu2 %v3519_v56  ;;  %2202 = vmatpush.bf16.msrb.mxu3 %v3647_v57  ;;  %v3679_v51 = vor.u32 %v4376_v48, %v3676_v49  ;;  %v3807_v53 = vor.u32 %v4408_v50, %v3804_v52  ;;  %v3436_v56 = vld [vmem:[#allocation17 + $0x30] sm:$0xf0]  ;;  %v4348_v57 = vld [vmem:[#allocation17 + $0x124] sm:$0xf]  ;;  %v3522_v52 = vld [vmem:[#allocation17 + $0xc8] sm:$0xf] }
 0x203   :  { %v3439_v58 = vor.u32 %v4316_v54, %v3436_v56  ;;  %v3567_v60 = vor.u32 %v4348_v57, %v3564_v59  ;;  %v4339_v56 = vld [vmem:[#allocation17 + $0xd4] sm:$0xf0]  ;;  %v3650_v57 = vld [vmem:[#allocation17 + $0x1c8] sm:$0xf] }
 0x204   :  { %v3523_v55 = vor.u32 %v4339_v56, %v3522_v52  ;;  %v4411_v52 = vld [vmem:[#allocation17 + $0x314] sm:$0xf0] }
 0x205   :  { %2216 = vmatpush.bf16.msra.mxu0 %v3759_v62  ;;  %2229 = vmatpush.bf16.msra.mxu1 %v3887_v63  ;;  %v3420_v62 = vld [vmem:[#allocation17 + $0x10] sm:$0xf0] }
 0x206   :  { %2190 = vmatpush.bf16.msrb.mxu2 %v3503_v5  ;;  %2203 = vmatpush.bf16.msrb.mxu3 %v3631_v6  ;;  %v3423_v63 = vor.u32 %v4312_v61, %v3420_v62  ;;  %v1340_v5 = vperm.slane %v1336_v4, 2  ;;  %v1341_v6 = vperm.slane %v1336_v4, 3  ;;  %v3746_v61 = vld [vmem:[#allocation17 + $0x288] sm:$0xf]  ;;  %v4395_v62 = vld [vmem:[#allocation17 + $0x294] sm:$0xf0] }
 0x209   :  { %2217 = vmatpush.bf16.msra.mxu0 %v3743_v11  ;;  %2230 = vmatpush.bf16.msra.mxu1 %v3871_v12  ;;  %v3794_v11 = vld [vmem:[#allocation17 + $0x2e8] sm:$0xf] }
 0x20a   :  { %2191 = vmatpush.bf16.msrb.mxu2 %v3487_v19  ;;  %2204 = vmatpush.bf16.msrb.mxu3 %v3615_v20  ;;  %v1338_v19 = vperm.slane %v1336_v4, 0  ;;  %v1339_v20 = vperm.slane %v1336_v4, 1  ;;  %v3795_v29 = vor.u32 %v4407_v14, %v3794_v11  ;;  %v3506_v4 = vld [vmem:[#allocation17 + $0xa8] sm:$0xf]  ;;  %v4391_v11 = vld [vmem:[#allocation17 + $0x274] sm:$0xf0] }
 0x20d   :  { %2218 = vmatpush.bf16.msra.mxu0 %v3727_v21  ;;  %2231 = vmatpush.bf16.msra.mxu1 %v3855_v22 }
 0x20e   :  { %2192 = vmatpush.bf16.msrb.mxu2 %v3471_v25  ;;  %2205 = vmatpush.bf16.msrb.mxu3 %v3599_v35  ;;  %v4435_v25 = vld [vmem:[#allocation17 + $0x3d4] sm:$0xf0] }
 0x20f   :  { %v3907_v43 = vor.u32 %v4435_v25, %v3906_v33  ;;  %v4327_v33 = vld [vmem:[#allocation17 + $0x74] sm:$0xf0]  ;;  %v3602_v25 = vld [vmem:[#allocation17 + $0x168] sm:$0xf] }
 0x211   :  { %2219 = vmatpush.bf16.msra.mxu0 %v3711_v28  ;;  %2232 = vmatpush.bf16.msra.mxu1 %v3839_v30  ;;  %v3778_v30 = vld [vmem:[#allocation17 + $0x2c8] sm:$0xf] }
 0x212   :  { %2193 = vmatpush.bf16.msrb.mxu2 %v3455_v45  ;;  %2206 = vmatpush.bf16.msrb.mxu3 %v3583_v47  ;;  %v3779_v42 = vor.u32 %v4403_v32, %v3778_v30  ;;  %v4399_v45 = vld [vmem:[#allocation17 + $0x2b4] sm:$0xf0]  ;;  %v3474_v32 = vld [vmem:[#allocation17 + $0x68] sm:$0xf] }
 0x213   :  { %v4431_v47 = vld [vmem:[#allocation17 + $0x3b4] sm:$0xf0]  ;;  %v3763_v59 = vor.u32 %v4399_v45, %v3762_v44 }
 0x214   :  { %v4355_v44 = vld [vmem:[#allocation17 + $0x154] sm:$0xf0] }
 0x215   :  { %2220 = vmatpush.bf16.msra.mxu0 %v3695_v38  ;;  %2233 = vmatpush.bf16.msra.mxu1 %v3823_v41  ;;  %v3538_v38 = vld [vmem:[#allocation17 + $0xe8] sm:$0xf] }
 0x216   :  { %2194 = vmatpush.bf16.msrb.mxu2 %v3439_v58  ;;  %2207 = vmatpush.bf16.msrb.mxu3 %v3567_v60  ;;  %v4371_v58 = vld [vmem:[#allocation17 + $0x1d4] sm:$0xf0]  ;;  %v3891_v60 = vor.u32 %v4431_v47, %v3890_v46  ;;  %v3682_v47 = vld [vmem:[#allocation17 + $0x208] sm:$0xf] }
 0x219   :  { %2221 = vmatpush.bf16.msra.mxu0 %v3679_v51  ;;  %2234 = vmatpush.bf16.msra.mxu1 %v3807_v53 }
 0x21a   :  { %2195 = vmatpush.bf16.msrb.mxu2 %v3423_v63  ;;  %2208 = vmatpush.bf16.msrb.mxu3 %v3551_v3  ;;  %v3874_v63 = vld [vmem:[#allocation17 + $0x388] sm:$0xf]  ;;  %v3651_v3 = vor.u32 %v4371_v58, %v3650_v57  ;;  %v4437_v58 = vld [vmem:[#allocation17 + $0x3ec] sm:$0xf] }
 0x279   :  { %v1315_v7 = vpop.f32.mrf.mxu0  ;;  %v1328_v8 = vpop.f32.mrf.mxu1 }
 0x27a   :  { %v1334_v9 = vadd.f32 %v1315_v7, %v4974_v17  ;;  %v1335_v10 = vadd.f32 %v1328_v8, %v4976_v18  ;;  %v3923_v17 = vor.u32 %v4439_v16, %v3922_v15  ;;  %v4367_v7 = vld [vmem:[#allocation17 + $0x1b4] sm:$0xf0]  ;;  %v3747_v8 = vor.u32 %v4395_v62, %v3746_v61  ;;  %v3490_v16 = vld [vmem:[#allocation17 + $0x88] sm:$0xf] }
 0x27b   :  { %v4319_v61 = vld [vmem:[#allocation17 + $0x34] sm:$0xf0]  ;;  %v3570_v62 = vld [vmem:[#allocation17 + $0x128] sm:$0xf] }
 0x27c   :  { %v1348_v12 = vadd.f32 %v1340_v5, %v1334_v9  ;;  %v1349_v13 = vadd.f32 %v1341_v6, %v1335_v10  ;;  %v4335_v5 = vld [vmem:[#allocation17 + $0xb4] sm:$0xf0]  ;;  %v3634_v6 = vld [vmem:[#allocation17 + $0x1a8] sm:$0xf]  ;;  %v3875_v9 = vor.u32 %v4427_v1, %v3874_v63 }
 0x27d   :  { %v3730_v10 = vld [vmem:[#allocation17 + $0x268] sm:$0xf]  ;;  %v3507_v14 = vor.u32 %v4335_v5, %v3506_v4  ;;  %v3635_v15 = vor.u32 %v4367_v7, %v3634_v6  ;;  %v4351_v63 = vld [vmem:[#allocation17 + $0x134] sm:$0xf0]  ;;  %v4401_v5 = vld [vmem:[#allocation17 + $0x2cc] sm:$0xf] }
 0x27e   :  { %v1352_v21 = vmax.f32 %v1348_v12, 0.0  ;;  %v1353_v22 = vmax.f32 %v1349_v13, 0.0  ;;  %v1289_v23 = vpop.f32.mrf.mxu2  ;;  %v1302_v24 = vpop.f32.mrf.mxu3  ;;  %v3858_v12 = vld [vmem:[#allocation17 + $0x368] sm:$0xf]  ;;  %v4423_v13 = vld [vmem:[#allocation17 + $0x374] sm:$0xf0] }
 0x27f   :  { %v1332_v27 = vadd.f32 %v1289_v23, %v4970_v0  ;;  %v1333_v28 = vadd.f32 %v1302_v24, %v4972_v2  ;;  %v4343_v0 = vld [vmem:[#allocation17 + $0xf4] sm:$0xf0]  ;;  %v3666_v2 = vld [vmem:[#allocation17 + $0x1e8] sm:$0xf]  ;;  %v3859_v23 = vor.u32 %v4423_v13, %v3858_v12  ;;  %v3780_v6 = vld [vmem:[#allocation17 + $0x2d8] sm:$0xf0] }
 0x280   :  { %v4992_v18 = vpack.c.bf16 %v1352_v21, %v1352_v21  ;;  %v4994_v31 = vpack.c.bf16 %v1353_v22, %v1353_v22  ;;  %v3539_v50 = vor.u32 %v4343_v0, %v3538_v38  ;;  %v3667_v51 = vor.u32 %v4375_v39, %v3666_v2  ;;  %v4363_v21 = vld [vmem:[#allocation17 + $0x194] sm:$0xf0]  ;;  %v3714_v24 = vld [vmem:[#allocation17 + $0x248] sm:$0xf]  ;;  %v4433_v7 = vld [vmem:[#allocation17 + $0x3cc] sm:$0xf] }
 0x281   :  { %v1346_v34 = vadd.f32 %v1338_v19, %v1332_v27  ;;  %v1347_v35 = vadd.f32 %v1339_v20, %v1333_v28  ;;  %v1317_v36 = vpop.f32.mrf.mxu0  ;;  %v1330_v37 = vpop.f32.mrf.mxu1  ;;  %v4331_v19 = vld [vmem:[#allocation17 + $0x94] sm:$0xf0]  ;;  %v3618_v20 = vld [vmem:[#allocation17 + $0x188] sm:$0xf]  ;;  %v3731_v22 = vor.u32 %v4391_v11, %v3730_v10  ;;  %v3475_v39 = vor.u32 %v4327_v33, %v3474_v32  ;;  %v3908_v10 = vld [vmem:[#allocation17 + $0x3d8] sm:$0xf0] }
 0x282   :  { %2170 = vmatmul.bf16.vlgmr.msrb.gmra.mxu0 %v4992_v18  ;;  %2183 = vmatmul.bf16.vlgmr.msrb.gmra.mxu1 %v4994_v31  ;;  %v4387_v27 = vld [vmem:[#allocation17 + $0x254] sm:$0xf0]  ;;  %v3842_v28 = vld [vmem:[#allocation17 + $0x348] sm:$0xf]  ;;  %v3619_v30 = vor.u32 %v4363_v21, %v3618_v20  ;;  %v3668_v20 = vld [vmem:[#allocation17 + $0x1f8] sm:$0xf0]  ;;  %v3783_v21 = vor.u32 %v4401_v5, %v3780_v6 }
 0x283   :  { %v1350_v40 = vmax.f32 %v1346_v34, 0.0  ;;  %v1351_v41 = vmax.f32 %v1347_v35, 0.0  ;;  %2266 = vmatpush.bf16.msrb.mxu0 %v3795_v29  ;;  %2279 = vmatpush.bf16.msrb.mxu1 %v3923_v17  ;;  %v4419_v29 = vld [vmem:[#allocation17 + $0x354] sm:$0xf0]  ;;  %v3491_v17 = vor.u32 %v4331_v19, %v3490_v16  ;;  %v3715_v35 = vor.u32 %v4387_v27, %v3714_v24  ;;  %v3698_v37 = vld [vmem:[#allocation17 + $0x228] sm:$0xf] }
 0x284   :  { %v4359_v34 = vld [vmem:[#allocation17 + $0x174] sm:$0xf0]  ;;  %v3843_v36 = vor.u32 %v4419_v29, %v3842_v28  ;;  %v3826_v0 = vld [vmem:[#allocation17 + $0x328] sm:$0xf]  ;;  %v3540_v16 = vld [vmem:[#allocation17 + $0xf8] sm:$0xf0] }
 0x285   :  { %v4998_v48 = vpack.c.bf16 %v1350_v40, %v1350_v40  ;;  %v5000_v49 = vpack.c.bf16 %v1351_v41, %v1351_v41  ;;  %v4383_v38 = vld [vmem:[#allocation17 + $0x234] sm:$0xf0]  ;;  %v3603_v40 = vor.u32 %v4359_v34, %v3602_v25  ;;  %v3458_v41 = vld [vmem:[#allocation17 + $0x48] sm:$0xf]  ;;  %v4373_v19 = vld [vmem:[#allocation17 + $0x1ec] sm:$0xf] }
 0x286   :  { %v1291_v53 = vpop.f32.mrf.mxu2  ;;  %v1304_v54 = vpop.f32.mrf.mxu3  ;;  %v4415_v2 = vld [vmem:[#allocation17 + $0x334] sm:$0xf0]  ;;  %v3699_v45 = vor.u32 %v4383_v38, %v3698_v37  ;;  %v3426_v11 = vld [vmem:[#allocation17 + $0x8] sm:$0xf]  ;;  %v3764_v28 = vld [vmem:[#allocation17 + $0x2b8] sm:$0xf0]  ;;  %v3671_v32 = vor.u32 %v4373_v19, %v3668_v20 }
 0x287   :  { %2267 = vmatpush.bf16.msrb.mxu0 %v3779_v42  ;;  %2280 = vmatpush.bf16.msrb.mxu1 %v3907_v43  ;;  %v4323_v42 = vld [vmem:[#allocation17 + $0x54] sm:$0xf0]  ;;  %v3586_v43 = vld [vmem:[#allocation17 + $0x148] sm:$0xf]  ;;  %v3827_v46 = vor.u32 %v4415_v2, %v3826_v0  ;;  %v4405_v53 = vld [vmem:[#allocation17 + $0x2ec] sm:$0xf] }
 0x288   :  { %2144 = vmatmul.bf16.vlgmr.msra.gmra.mxu2 %v4998_v48  ;;  %2157 = vmatmul.bf16.vlgmr.msra.gmra.mxu3 %v5000_v49  ;;  %v3796_v54 = vld [vmem:[#allocation17 + $0x2f8] sm:$0xf0]  ;;  %v3459_v56 = vor.u32 %v4323_v42, %v3458_v41  ;;  %v3587_v57 = vor.u32 %v4355_v44, %v3586_v43  ;;  %v4315_v12 = vld [vmem:[#allocation17 + $0x14] sm:$0xf0]  ;;  %v3554_v13 = vld [vmem:[#allocation17 + $0x108] sm:$0xf] }
 0x289   :  { %2240 = vmatpush.bf16.msra.mxu2 %v3539_v50  ;;  %2253 = vmatpush.bf16.msra.mxu3 %v3667_v51  ;;  %v4379_v50 = vld [vmem:[#allocation17 + $0x214] sm:$0xf0]  ;;  %v3810_v51 = vld [vmem:[#allocation17 + $0x308] sm:$0xf]  ;;  %v3427_v24 = vor.u32 %v4315_v12, %v3426_v11  ;;  %v4429_v29 = vld [vmem:[#allocation17 + $0x3ac] sm:$0xf] }
 0x28a   :  { %v3683_v1 = vor.u32 %v4379_v50, %v3682_v47  ;;  %v4337_v33 = vld [vmem:[#allocation17 + $0xcc] sm:$0xf]  ;;  %v3524_v25 = vld [vmem:[#allocation17 + $0xd8] sm:$0xf0] }
 0x28b   :  { %2268 = vmatpush.bf16.msrb.mxu0 %v3763_v59  ;;  %2281 = vmatpush.bf16.msrb.mxu1 %v3891_v60  ;;  %v3924_v59 = vld [vmem:[#allocation17 + $0x3f8] sm:$0xf0]  ;;  %v3442_v60 = vld [vmem:[#allocation17 + $0x28] sm:$0xf]  ;;  %v4369_v34 = vld [vmem:[#allocation17 + $0x1cc] sm:$0xf] }
 0x28c   :  { %v3927_v4 = vor.u32 %v4437_v58, %v3924_v59  ;;  %v4393_v38 = vld [vmem:[#allocation17 + $0x28c] sm:$0xf]  ;;  %v3748_v0 = vld [vmem:[#allocation17 + $0x298] sm:$0xf0] }
 0x28d   :  { %2241 = vmatpush.bf16.msra.mxu2 %v3523_v55  ;;  %2254 = vmatpush.bf16.msra.mxu3 %v3651_v3  ;;  %v3811_v55 = vor.u32 %v4411_v52, %v3810_v51  ;;  %v3799_v3 = vor.u32 %v4405_v53, %v3796_v54  ;;  %v4425_v2 = vld [vmem:[#allocation17 + $0x38c] sm:$0xf]  ;;  %v3508_v43 = vld [vmem:[#allocation17 + $0xb8] sm:$0xf0] }
 0x28e   :  { %v4333_v42 = vld [vmem:[#allocation17 + $0xac] sm:$0xf]  ;;  %v3732_v51 = vld [vmem:[#allocation17 + $0x278] sm:$0xf0] }
 0x28f   :  { %2269 = vmatpush.bf16.msrb.mxu0 %v3747_v8  ;;  %2282 = vmatpush.bf16.msrb.mxu1 %v3875_v9  ;;  %v3443_v8 = vor.u32 %v4319_v61, %v3442_v60  ;;  %v3571_v9 = vor.u32 %v4351_v63, %v3570_v62  ;;  %v4365_v44 = vld [vmem:[#allocation17 + $0x1ac] sm:$0xf]  ;;  %v3860_v53 = vld [vmem:[#allocation17 + $0x378] sm:$0xf0]  ;;  %v3511_v54 = vor.u32 %v4333_v42, %v3508_v43  ;;  %v3986_v43 = vld [vmem:[#allocation18 + $0x70] sm:$0xf] }
 0x290   :  { %v4389_v50 = vld [vmem:[#allocation17 + $0x26c] sm:$0xf]  ;;  %v3492_v58 = vld [vmem:[#allocation17 + $0x98] sm:$0xf0] }
 0x291   :  { %2242 = vmatpush.bf16.msra.mxu2 %v3507_v14  ;;  %2255 = vmatpush.bf16.msra.mxu3 %v3635_v15  ;;  %v4347_v14 = vld [vmem:[#allocation17 + $0x114] sm:$0xf0]  ;;  %v4341_v15 = vld [vmem:[#allocation17 + $0xec] sm:$0xf]  ;;  %v3620_v60 = vld [vmem:[#allocation17 + $0x198] sm:$0xf0]  ;;  %v3735_v61 = vor.u32 %v4389_v50, %v3732_v51 }
 0x292   :  { %2222 = vmatmul.bf16.vlgmr.msra.gmra.mxu0 %v4992_v18  ;;  %2235 = vmatmul.bf16.vlgmr.msra.gmra.mxu1 %v4994_v31  ;;  %v3555_v27 = vor.u32 %v4347_v14, %v3554_v13  ;;  %v4421_v52 = vld [vmem:[#allocation17 + $0x36c] sm:$0xf]  ;;  %v3700_v13 = vld [vmem:[#allocation17 + $0x238] sm:$0xf0] }
 0x293   :  { %2270 = vmatpush.bf16.msrb.mxu0 %v3731_v22  ;;  %2283 = vmatpush.bf16.msrb.mxu1 %v3859_v23  ;;  %v3911_v22 = vor.u32 %v4433_v7, %v3908_v10  ;;  %v4397_v23 = vld [vmem:[#allocation17 + $0x2ac] sm:$0xf]  ;;  %v3863_v62 = vor.u32 %v4421_v52, %v3860_v53  ;;  %v3476_v7 = vld [vmem:[#allocation17 + $0x78] sm:$0xf0]  ;;  %v3978_v53 = vld [vmem:[#allocation18 + $0x60] sm:$0xf] }
 0x294   :  { %v4361_v59 = vld [vmem:[#allocation17 + $0x18c] sm:$0xf]  ;;  %v3556_v42 = vld [vmem:[#allocation17 + $0x118] sm:$0xf0] }
 0x295   :  { %2243 = vmatpush.bf16.msra.mxu2 %v3491_v17  ;;  %2256 = vmatpush.bf16.msra.mxu3 %v3619_v30  ;;  %v3892_v17 = vld [vmem:[#allocation17 + $0x3b8] sm:$0xf0]  ;;  %v3543_v30 = vor.u32 %v4341_v15, %v3540_v16  ;;  %v4385_v63 = vld [vmem:[#allocation17 + $0x24c] sm:$0xf]  ;;  %v3623_v5 = vor.u32 %v4361_v59, %v3620_v60  ;;  %v4449_v60 = vld [vmem:[#allocation18 + $0x44] sm:$0xf0] }
 0x296   :  { %v3895_v37 = vor.u32 %v4429_v29, %v3892_v17  ;;  %v4325_v6 = vld [vmem:[#allocation17 + $0x6c] sm:$0xf]  ;;  %v3828_v15 = vld [vmem:[#allocation17 + $0x338] sm:$0xf0] }
 0x297   :  { %2271 = vmatpush.bf16.msrb.mxu0 %v3715_v35  ;;  %2284 = vmatpush.bf16.msrb.mxu1 %v3843_v36  ;;  %v3652_v35 = vld [vmem:[#allocation17 + $0x1d8] sm:$0xf0]  ;;  %v3767_v36 = vor.u32 %v4397_v23, %v3764_v28  ;;  %v4381_v12 = vld [vmem:[#allocation17 + $0x22c] sm:$0xf]  ;;  %v3479_v16 = vor.u32 %v4325_v6, %v3476_v7  ;;  %v3938_v6 = vld [vmem:[#allocation18 + $0x10] sm:$0xf] }
 0x298   :  { %2196 = vmatmul.bf16.vlgmr.msrb.gmra.mxu2 %v4998_v48  ;;  %2209 = vmatmul.bf16.vlgmr.msrb.gmra.mxu3 %v5000_v49  ;;  %v3655_v41 = vor.u32 %v4369_v34, %v3652_v35  ;;  %v4413_v14 = vld [vmem:[#allocation17 + $0x32c] sm:$0xf]  ;;  %v3588_v23 = vld [vmem:[#allocation17 + $0x158] sm:$0xf0] }
 0x299   :  { %2244 = vmatpush.bf16.msra.mxu2 %v3475_v39  ;;  %2257 = vmatpush.bf16.msra.mxu3 %v3603_v40  ;;  %v3876_v39 = vld [vmem:[#allocation17 + $0x398] sm:$0xf0]  ;;  %v3527_v40 = vor.u32 %v4337_v33, %v3524_v25  ;;  %v4321_v20 = vld [vmem:[#allocation17 + $0x4c] sm:$0xf] }
 0x29a   :  { %v3879_v47 = vor.u32 %v4425_v2, %v3876_v39  ;;  %v4377_v28 = vld [vmem:[#allocation17 + $0x20c] sm:$0xf]  ;;  %v3684_v29 = vld [vmem:[#allocation17 + $0x218] sm:$0xf0] }
 0x29b   :  { %2272 = vmatpush.bf16.msrb.mxu0 %v3699_v45  ;;  %2285 = vmatpush.bf16.msrb.mxu1 %v3827_v46  ;;  %v3636_v45 = vld [vmem:[#allocation17 + $0x1b8] sm:$0xf0]  ;;  %v3751_v46 = vor.u32 %v4393_v38, %v3748_v0  ;;  %v4409_v17 = vld [vmem:[#allocation17 + $0x30c] sm:$0xf] }
 0x29c   :  { %v4317_v25 = vld [vmem:[#allocation17 + $0x2c] sm:$0xf]  ;;  %v3444_v34 = vld [vmem:[#allocation17 + $0x38] sm:$0xf0] }
 0x29d   :  { %2245 = vmatpush.bf16.msra.mxu2 %v3459_v56  ;;  %2258 = vmatpush.bf16.msra.mxu3 %v3587_v57  ;;  %v3639_v56 = vor.u32 %v4365_v44, %v3636_v45  ;;  %v4329_v57 = vld [vmem:[#allocation17 + $0x8c] sm:$0xf]  ;;  %v3447_v0 = vor.u32 %v4317_v25, %v3444_v34  ;;  %v4455_v44 = vld [vmem:[#allocation18 + $0x74] sm:$0xf0]  ;;  %v4050_v45 = vld [vmem:[#allocation18 + $0xf0] sm:$0xf] }
 0x29e   :  { %v4349_v35 = vld [vmem:[#allocation17 + $0x12c] sm:$0xf]  ;;  %v3987_v51 = vor.u32 %v4455_v44, %v3986_v43  ;;  %v4461_v25 = vld [vmem:[#allocation18 + $0xa4] sm:$0xf0]  ;;  %v4106_v34 = vld [vmem:[#allocation18 + $0x160] sm:$0xf] }
 0x29f   :  { %2273 = vmatpush.bf16.msrb.mxu0 %v3683_v1  ;;  %2286 = vmatpush.bf16.msrb.mxu1 %v3811_v55  ;;  %v3716_v1 = vld [vmem:[#allocation17 + $0x258] sm:$0xf0]  ;;  %v4417_v55 = vld [vmem:[#allocation17 + $0x34c] sm:$0xf]  ;;  %v4483_v43 = vld [vmem:[#allocation18 + $0x154] sm:$0xf0] }
 0x2a0   :  { %v3719_v10 = vor.u32 %v4385_v63, %v3716_v1  ;;  %v4313_v39 = vld [vmem:[#allocation17 + $0xc] sm:$0xf]  ;;  %v3946_v1 = vld [vmem:[#allocation18 + $0x20] sm:$0xf]  ;;  %v4448_v44 = vld [vmem:[#allocation18 + $0x44] sm:$0xf] }
 0x2a1   :  { %2246 = vmatpush.bf16.msra.mxu2 %v3443_v8  ;;  %2259 = vmatpush.bf16.msra.mxu3 %v3571_v9  ;;  %v4357_v8 = vld [vmem:[#allocation17 + $0x16c] sm:$0xf]  ;;  %v3604_v9 = vld [vmem:[#allocation17 + $0x178] sm:$0xf0] }
 0x2a2   :  { %2274 = vmatmul.bf16.vlgmr.msrb.gmra.mxu0 %v4992_v18  ;;  %2287 = vmatmul.bf16.vlgmr.msrb.gmra.mxu1 %v4994_v31  ;;  %v3607_v19 = vor.u32 %v4357_v8, %v3604_v9  ;;  %v4467_v8 = vld [vmem:[#allocation18 + $0xd4] sm:$0xf0] }
 0x2a3   :  { %2318 = vmatpush.bf16.msra.mxu0 %v3799_v3  ;;  %2331 = vmatpush.bf16.msra.mxu1 %v3927_v4  ;;  %v3844_v3 = vld [vmem:[#allocation17 + $0x358] sm:$0xf0]  ;;  %v3495_v4 = vor.u32 %v4329_v57, %v3492_v58  ;;  %v3970_v57 = vld [vmem:[#allocation18 + $0x50] sm:$0xf]  ;;  %v4451_v58 = vld [vmem:[#allocation18 + $0x54] sm:$0xf0] }
 0x2a4   :  { %v3847_v11 = vor.u32 %v4417_v55, %v3844_v3  ;;  %v3971_v59 = vor.u32 %v4451_v58, %v3970_v57  ;;  %v4445_v55 = vld [vmem:[#allocation18 + $0x24] sm:$0xf0]  ;;  %v4042_v3 = vld [vmem:[#allocation18 + $0xe0] sm:$0xf]  ;;  %v3956_v57 = vld [vmem:[#allocation18 + $0x38] sm:$0xf0] }
 0x2a5   :  { %2247 = vmatpush.bf16.msra.mxu2 %v3427_v24  ;;  %2260 = vmatpush.bf16.msra.mxu3 %v3555_v27  ;;  %v3703_v24 = vor.u32 %v4381_v12, %v3700_v13  ;;  %v3831_v27 = vor.u32 %v4413_v14, %v3828_v15  ;;  %v4441_v12 = vld [vmem:[#allocation18 + $0x4] sm:$0xf0]  ;;  %v4026_v13 = vld [vmem:[#allocation18 + $0xc0] sm:$0xf] }
 0x2a6   :  { %v4465_v15 = vld [vmem:[#allocation18 + $0xc4] sm:$0xf0] }
 0x2a7   :  { %2319 = vmatpush.bf16.msra.mxu0 %v3783_v21  ;;  %2332 = vmatpush.bf16.msra.mxu1 %v3911_v22  ;;  %v3460_v21 = vld [vmem:[#allocation17 + $0x58] sm:$0xf0]  ;;  %v4353_v22 = vld [vmem:[#allocation17 + $0x14c] sm:$0xf] }
 0x2a8   :  { %2248 = vmatmul.bf16.vlgmr.msra.gmra.mxu2 %v4998_v48  ;;  %2261 = vmatmul.bf16.vlgmr.msra.gmra.mxu3 %v5000_v49  ;;  %v3591_v33 = vor.u32 %v4353_v22, %v3588_v23  ;;  %v4018_v22 = vld [vmem:[#allocation18 + $0xb0] sm:$0xf]  ;;  %v4463_v23 = vld [vmem:[#allocation18 + $0xb4] sm:$0xf0] }
 0x2a9   :  { %2292 = vmatpush.bf16.msrb.mxu2 %v3543_v30  ;;  %2305 = vmatpush.bf16.msrb.mxu3 %v3671_v32  ;;  %v3812_v30 = vld [vmem:[#allocation17 + $0x318] sm:$0xf0]  ;;  %v3463_v32 = vor.u32 %v4321_v20, %v3460_v21  ;;  %v4027_v20 = vor.u32 %v4465_v15, %v4026_v13 }
 0x2aa   :  { %v3815_v38 = vor.u32 %v4409_v17, %v3812_v30  ;;  %v3980_v17 = vld [vmem:[#allocation18 + $0x68] sm:$0xf0] }
 0x2ab   :  { %2320 = vmatpush.bf16.msra.mxu0 %v3767_v36  ;;  %2333 = vmatpush.bf16.msra.mxu1 %v3895_v37  ;;  %v3572_v36 = vld [vmem:[#allocation17 + $0x138] sm:$0xf0]  ;;  %v3687_v37 = vor.u32 %v4377_v28, %v3684_v29  ;;  %v4487_v28 = vld [vmem:[#allocation18 + $0x174] sm:$0xf0]  ;;  %v4452_v29 = vld [vmem:[#allocation18 + $0x64] sm:$0xf] }
 0x2ac   :  { %v3575_v2 = vor.u32 %v4349_v35, %v3572_v36  ;;  %v4485_v36 = vld [vmem:[#allocation18 + $0x164] sm:$0xf0] }
 0x2ad   :  { %2293 = vmatpush.bf16.msrb.mxu2 %v3527_v40  ;;  %2306 = vmatpush.bf16.msrb.mxu3 %v3655_v41  ;;  %v3428_v40 = vld [vmem:[#allocation17 + $0x18] sm:$0xf0]  ;;  %v4345_v41 = vld [vmem:[#allocation17 + $0x10c] sm:$0xf] }
 0x2ae   :  { %v3559_v50 = vor.u32 %v4345_v41, %v3556_v42  ;;  %v4098_v41 = vld [vmem:[#allocation18 + $0x150] sm:$0xf] }
 0x2af   :  { %2321 = vmatpush.bf16.msra.mxu0 %v3751_v46  ;;  %2334 = vmatpush.bf16.msra.mxu1 %v3879_v47  ;;  %v4471_v46 = vld [vmem:[#allocation18 + $0xf4] sm:$0xf0]  ;;  %v3431_v47 = vor.u32 %v4313_v39, %v3428_v40  ;;  %v4002_v39 = vld [vmem:[#allocation18 + $0x90] sm:$0xf] }
 0x2b0   :  { %v4051_v52 = vor.u32 %v4471_v46, %v4050_v45  ;;  %v4459_v40 = vld [vmem:[#allocation18 + $0x94] sm:$0xf0]  ;;  %v3964_v45 = vld [vmem:[#allocation18 + $0x48] sm:$0xf0]  ;;  %v4099_v46 = vor.u32 %v4483_v43, %v4098_v41  ;;  %v4501_v43 = vld [vmem:[#allocation18 + $0x1e4] sm:$0xf0] }
 0x2b1   :  { %2294 = vmatpush.bf16.msrb.mxu2 %v3511_v54  ;;  %2307 = vmatpush.bf16.msrb.mxu3 %v3639_v56  ;;  %v4453_v54 = vld [vmem:[#allocation18 + $0x64] sm:$0xf0]  ;;  %v4003_v42 = vor.u32 %v4459_v40, %v4002_v39  ;;  %v4486_v39 = vld [vmem:[#allocation18 + $0x174] sm:$0xf]  ;;  %v4116_v40 = vld [vmem:[#allocation18 + $0x178] sm:$0xf0] }
 0x2b2   :  { %v3979_v56 = vor.u32 %v4453_v54, %v3978_v53  ;;  %v4481_v54 = vld [vmem:[#allocation18 + $0x144] sm:$0xf0]  ;;  %v4119_v41 = vor.u32 %v4486_v39, %v4116_v40  ;;  %v4474_v39 = vld [vmem:[#allocation18 + $0x114] sm:$0xf]  ;;  %v4068_v40 = vld [vmem:[#allocation18 + $0x118] sm:$0xf0] }
 0x2b3   :  { %2322 = vmatpush.bf16.msra.mxu0 %v3735_v61  ;;  %2335 = vmatpush.bf16.msra.mxu1 %v3863_v62  ;;  %v3954_v61 = vld [vmem:[#allocation18 + $0x30] sm:$0xf]  ;;  %v4447_v62 = vld [vmem:[#allocation18 + $0x34] sm:$0xf0] }
 0x2b4   :  { %v3955_v63 = vor.u32 %v4447_v62, %v3954_v61  ;;  %v4082_v61 = vld [vmem:[#allocation18 + $0x130] sm:$0xf]  ;;  %v4479_v62 = vld [vmem:[#allocation18 + $0x134] sm:$0xf0] }
 0x2b5   :  { %2295 = vmatpush.bf16.msrb.mxu2 %v3495_v4  ;;  %2308 = vmatpush.bf16.msrb.mxu3 %v3623_v5  ;;  %v3947_v4 = vor.u32 %v4445_v55, %v3946_v1  ;;  %v4469_v5 = vld [vmem:[#allocation18 + $0xe4] sm:$0xf0]  ;;  %v4444_v1 = vld [vmem:[#allocation18 + $0x24] sm:$0xf]  ;;  %v3948_v55 = vld [vmem:[#allocation18 + $0x28] sm:$0xf0] }
 0x2b6   :  { %v4043_v7 = vor.u32 %v4469_v5, %v4042_v3  ;;  %v4468_v3 = vld [vmem:[#allocation18 + $0xe4] sm:$0xf]  ;;  %v4044_v5 = vld [vmem:[#allocation18 + $0xe8] sm:$0xf0] }
 0x2b7   :  { %2323 = vmatpush.bf16.msra.mxu0 %v3719_v10  ;;  %2336 = vmatpush.bf16.msra.mxu1 %v3847_v11  ;;  %v3930_v11 = vld [vmem:[#allocation18] sm:$0xf] }
 0x2b8   :  { %v3931_v14 = vor.u32 %v4441_v12, %v3930_v11  ;;  %v3940_v11 = vld [vmem:[#allocation18 + $0x18] sm:$0xf0]  ;;  %v4466_v12 = vld [vmem:[#allocation18 + $0xd4] sm:$0xf] }
 0x2b9   :  { %2296 = vmatpush.bf16.msrb.mxu2 %v3479_v16  ;;  %2309 = vmatpush.bf16.msrb.mxu3 %v3607_v19  ;;  %v4454_v16 = vld [vmem:[#allocation18 + $0x74] sm:$0xf]  ;;  %v3988_v19 = vld [vmem:[#allocation18 + $0x78] sm:$0xf0] }
 0x2ba   :  { %v3991_v21 = vor.u32 %v4454_v16, %v3988_v19  ;;  %v4066_v16 = vld [vmem:[#allocation18 + $0x110] sm:$0xf]  ;;  %v4475_v19 = vld [vmem:[#allocation18 + $0x114] sm:$0xf0] }
 0x2bb   :  { %2324 = vmatpush.bf16.msra.mxu0 %v3703_v24  ;;  %2337 = vmatpush.bf16.msra.mxu1 %v3831_v27  ;;  %v4114_v24 = vld [vmem:[#allocation18 + $0x170] sm:$0xf]  ;;  %v4019_v27 = vor.u32 %v4463_v23, %v4018_v22  ;;  %v3932_v22 = vld [vmem:[#allocation18 + $0x8] sm:$0xf0]  ;;  %v4464_v23 = vld [vmem:[#allocation18 + $0xc4] sm:$0xf] }
 0x2bc   :  { %v4115_v30 = vor.u32 %v4487_v28, %v4114_v24  ;;  %v5023_v28 = vld [vmem:[%s5057_s10] sm:$0xf] }
 0x2bd   :  { %2297 = vmatpush.bf16.msrb.mxu2 %v3463_v32  ;;  %2310 = vmatpush.bf16.msrb.mxu3 %v3591_v33  ;;  %v3983_v32 = vor.u32 %v4452_v29, %v3980_v17  ;;  %v4010_v33 = vld [vmem:[#allocation18 + $0xa0] sm:$0xf] }
 0x2be   :  { %v4011_v35 = vor.u32 %v4461_v25, %v4010_v33  ;;  %v4058_v17 = vld [vmem:[#allocation18 + $0x100] sm:$0xf] }
 0x2bf   :  { %2325 = vmatpush.bf16.msra.mxu0 %v3687_v37  ;;  %2338 = vmatpush.bf16.msra.mxu1 %v3815_v38  ;;  %v4450_v37 = vld [vmem:[#allocation18 + $0x54] sm:$0xf]  ;;  %v3972_v38 = vld [vmem:[#allocation18 + $0x58] sm:$0xf0] }
 0x2c1   :  { %2298 = vmatpush.bf16.msrb.mxu2 %v3447_v0  ;;  %2311 = vmatpush.bf16.msrb.mxu3 %v3575_v2  ;;  %v4107_v0 = vor.u32 %v4485_v36, %v4106_v34  ;;  %v3975_v2 = vor.u32 %v4450_v37, %v3972_v38  ;;  %v4462_v36 = vld [vmem:[#allocation18 + $0xb4] sm:$0xf]  ;;  %v4020_v37 = vld [vmem:[#allocation18 + $0xb8] sm:$0xf0]  ;;  %v1488_v38 = vperm.slane %v5023_v28, 0 }
 0x2c2   :  { %2326 = vmatmul.bf16.vlgmr.msra.gmra.mxu0 %v4992_v18  ;;  %2339 = vmatmul.bf16.vlgmr.msra.gmra.mxu1 %v4994_v31  ;;  %v3962_v18 = vld [vmem:[#allocation18 + $0x40] sm:$0xf] }
 0x2c3   :  { %v3963_v31 = vor.u32 %v4449_v60, %v3962_v18  ;;  %2768 = vmatpush.bf16.msrb.mxu0 %v4115_v30  ;;  %v4470_v18 = vld [vmem:[#allocation18 + $0xf4] sm:$0xf]  ;;  %v4052_v60 = vld [vmem:[#allocation18 + $0xf8] sm:$0xf0]  ;;  %v4473_v30 = vld [vmem:[#allocation18 + $0x104] sm:$0xf0] }
 0x2c4   :  { %v4059_v34 = vor.u32 %v4473_v30, %v4058_v17  ;;  %v4138_v30 = vld [vmem:[#allocation18 + $0x1a0] sm:$0xf] }
 0x2c5   :  { %2299 = vmatpush.bf16.msrb.mxu2 %v3431_v47  ;;  %2312 = vmatpush.bf16.msrb.mxu3 %v3559_v50  ;;  %v3967_v47 = vor.u32 %v4448_v44, %v3964_v45  ;;  %v3994_v50 = vld [vmem:[#allocation18 + $0x80] sm:$0xf] }
 0x2c7   :  { %2769 = vmatpush.bf16.msrb.mxu0 %v4107_v0 }
 0x2c8   :  { %2300 = vmatmul.bf16.vlgmr.msrb.gmra.mxu2 %v4998_v48  ;;  %2313 = vmatmul.bf16.vlgmr.msrb.gmra.mxu3 %v5000_v49  ;;  %v4443_v48 = vld [vmem:[#allocation18 + $0x14] sm:$0xf0]  ;;  %v4034_v49 = vld [vmem:[#allocation18 + $0xd0] sm:$0xf] }
 0x2c9   :  { %2742 = vmatpush.bf16.msra.mxu2 %v3987_v51  ;;  %2755 = vmatpush.bf16.msra.mxu3 %v4051_v52  ;;  %v3939_v9 = vor.u32 %v4443_v48, %v3938_v6  ;;  %v4035_v10 = vor.u32 %v4467_v8, %v4034_v49  ;;  %v4457_v51 = vld [vmem:[#allocation18 + $0x84] sm:$0xf0]  ;;  %v4090_v52 = vld [vmem:[#allocation18 + $0x140] sm:$0xf]  ;;  %v4047_v6 = vor.u32 %v4468_v3, %v4044_v5  ;;  %v4100_v3 = vld [vmem:[#allocation18 + $0x158] sm:$0xf0] }
 0x2ca   :  { %v3995_v53 = vor.u32 %v4457_v51, %v3994_v50  ;;  %v4091_v58 = vor.u32 %v4481_v54, %v4090_v52  ;;  %v4074_v48 = vld [vmem:[#allocation18 + $0x120] sm:$0xf]  ;;  %v4012_v50 = vld [vmem:[#allocation18 + $0xa8] sm:$0xf0]  ;;  %v4484_v51 = vld [vmem:[#allocation18 + $0x164] sm:$0xf] }
 0x2cb   :  { %2770 = vmatpush.bf16.msrb.mxu0 %v4099_v46  ;;  %v4108_v54 = vld [vmem:[#allocation18 + $0x168] sm:$0xf0] }
 0x2cd   :  { %2743 = vmatpush.bf16.msra.mxu2 %v3979_v56  ;;  %2756 = vmatpush.bf16.msra.mxu3 %v4043_v7  ;;  %v4446_v56 = vld [vmem:[#allocation18 + $0x34] sm:$0xf]  ;;  %v4477_v7 = vld [vmem:[#allocation18 + $0x124] sm:$0xf0] }
 0x2cf   :  { %2771 = vmatpush.bf16.msrb.mxu0 %v4091_v58  ;;  %v4162_v58 = vld [vmem:[#allocation18 + $0x1d0] sm:$0xf] }
 0x2d1   :  { %2744 = vmatpush.bf16.msra.mxu2 %v3971_v59  ;;  %2757 = vmatpush.bf16.msra.mxu3 %v4035_v10  ;;  %v3959_v59 = vor.u32 %v4446_v56, %v3956_v57  ;;  %v4442_v10 = vld [vmem:[#allocation18 + $0x14] sm:$0xf]  ;;  %v4111_v56 = vor.u32 %v4484_v51, %v4108_v54  ;;  %v4489_v51 = vld [vmem:[#allocation18 + $0x184] sm:$0xf0] }
 0x2d2   :  { %v3943_v13 = vor.u32 %v4442_v10, %v3940_v11  ;;  %v4456_v11 = vld [vmem:[#allocation18 + $0x84] sm:$0xf] }
 0x2d5   :  { %2745 = vmatpush.bf16.msra.mxu2 %v3963_v31  ;;  %2758 = vmatpush.bf16.msra.mxu3 %v4027_v20  ;;  %v4055_v31 = vor.u32 %v4470_v18, %v4052_v60  ;;  %v4067_v20 = vor.u32 %v4475_v19, %v4066_v16  ;;  %v4092_v16 = vld [vmem:[#allocation18 + $0x148] sm:$0xf0] }
 0x2d9   :  { %2746 = vmatpush.bf16.msra.mxu2 %v3955_v63  ;;  %2759 = vmatpush.bf16.msra.mxu3 %v4019_v27  ;;  %v4083_v63 = vor.u32 %v4479_v62, %v4082_v61  ;;  %v4028_v27 = vld [vmem:[#allocation18 + $0xc8] sm:$0xf0]  ;;  %v4458_v61 = vld [vmem:[#allocation18 + $0x94] sm:$0xf]  ;;  %v4004_v62 = vld [vmem:[#allocation18 + $0x98] sm:$0xf0] }
 0x2da   :  { %v4031_v29 = vor.u32 %v4464_v23, %v4028_v27  ;;  %v4084_v27 = vld [vmem:[#allocation18 + $0x138] sm:$0xf0] }
 0x2db   :  { %2772 = vmatpush.bf16.msrb.mxu0 %v4083_v63  ;;  %v4482_v63 = vld [vmem:[#allocation18 + $0x154] sm:$0xf] }
 0x2dd   :  { %2747 = vmatpush.bf16.msra.mxu2 %v3947_v4  ;;  %2760 = vmatpush.bf16.msra.mxu3 %v4011_v35  ;;  %v3951_v4 = vor.u32 %v4444_v1, %v3948_v55  ;;  %v4503_v35 = vld [vmem:[#allocation18 + $0x1f4] sm:$0xf0]  ;;  %v4007_v55 = vor.u32 %v4458_v61, %v4004_v62  ;;  %v4180_v61 = vld [vmem:[#allocation18 + $0x1f8] sm:$0xf0] }
 0x2e1   :  { %2748 = vmatpush.bf16.msra.mxu2 %v3939_v9  ;;  %2761 = vmatpush.bf16.msra.mxu3 %v4003_v42  ;;  %v4075_v9 = vor.u32 %v4477_v7, %v4074_v48  ;;  %v4170_v42 = vld [vmem:[#allocation18 + $0x1e0] sm:$0xf]  ;;  %v4497_v48 = vld [vmem:[#allocation18 + $0x1c4] sm:$0xf0] }
 0x2e2   :  { %v4171_v46 = vor.u32 %v4501_v43, %v4170_v42 }
 0x2e3   :  { %2773 = vmatpush.bf16.msrb.mxu0 %v4075_v9 }
 0x2e5   :  { %2749 = vmatpush.bf16.msra.mxu2 %v3931_v14  ;;  %2762 = vmatpush.bf16.msra.mxu3 %v3995_v53  ;;  %v4036_v14 = vld [vmem:[#allocation18 + $0xd8] sm:$0xf0] }
 0x2e6   :  { %v4039_v15 = vor.u32 %v4466_v12, %v4036_v14  ;;  %v3996_v12 = vld [vmem:[#allocation18 + $0x88] sm:$0xf0] }
 0x2e7   :  { %2774 = vmatpush.bf16.msrb.mxu0 %v4067_v20  ;;  %v4146_v20 = vld [vmem:[#allocation18 + $0x1b0] sm:$0xf] }
 0x2e9   :  { %2794 = vmatpush.bf16.msrb.mxu2 %v3991_v21  ;;  %2807 = vmatpush.bf16.msrb.mxu3 %v4055_v31  ;;  %v4440_v21 = vld [vmem:[#allocation18 + $0x4] sm:$0xf] }
 0x2ea   :  { %v3935_v24 = vor.u32 %v4440_v21, %v3932_v22  ;;  %v4495_v21 = vld [vmem:[#allocation18 + $0x1b4] sm:$0xf0] }
 0x2eb   :  { %2775 = vmatpush.bf16.msrb.mxu0 %v4059_v34  ;;  %v4147_v23 = vor.u32 %v4495_v21, %v4146_v20 }
 0x2ed   :  { %2795 = vmatpush.bf16.msrb.mxu2 %v3983_v32  ;;  %2808 = vmatpush.bf16.msrb.mxu3 %v4047_v6  ;;  %v4178_v32 = vld [vmem:[#allocation18 + $0x1f0] sm:$0xf]  ;;  %v4154_v6 = vld [vmem:[#allocation18 + $0x1c0] sm:$0xf] }
 0x2ee   :  { %v4179_v0 = vor.u32 %v4503_v35, %v4178_v32  ;;  %v4155_v10 = vor.u32 %v4497_v48, %v4154_v6  ;;  %v4493_v32 = vld [vmem:[#allocation18 + $0x1a4] sm:$0xf0]  ;;  %v4476_v35 = vld [vmem:[#allocation18 + $0x124] sm:$0xf]  ;;  %v4164_v6 = vld [vmem:[#allocation18 + $0x1d8] sm:$0xf0] }
 0x2ef   :  { %2820 = vmatpush.bf16.msra.mxu0 %v4119_v41  ;;  %v4139_v34 = vor.u32 %v4493_v32, %v4138_v30  ;;  %v4132_v30 = vld [vmem:[#allocation18 + $0x198] sm:$0xf0] }
 0x2f0   :  { %2781 = vmatpush.bf16.msrb.mxu1 %v4179_v0  ;;  %v4130_v0 = vld [vmem:[#allocation18 + $0x190] sm:$0xf] }
 0x2f1   :  { %2796 = vmatpush.bf16.msrb.mxu2 %v3975_v2  ;;  %2809 = vmatpush.bf16.msrb.mxu3 %v4039_v15  ;;  %v4023_v2 = vor.u32 %v4462_v36, %v4020_v37  ;;  %v3999_v15 = vor.u32 %v4456_v11, %v3996_v12  ;;  %v4076_v36 = vld [vmem:[#allocation18 + $0x128] sm:$0xf0]  ;;  %v4496_v12 = vld [vmem:[#allocation18 + $0x1c4] sm:$0xf] }
 0x2f3   :  { %2821 = vmatpush.bf16.msra.mxu0 %v4111_v56  ;;  %v4472_v56 = vld [vmem:[#allocation18 + $0x104] sm:$0xf] }
 0x2f4   :  { %2782 = vmatpush.bf16.msrb.mxu1 %v4171_v46 }
 0x2f5   :  { %2797 = vmatpush.bf16.msrb.mxu2 %v3967_v47  ;;  %2810 = vmatpush.bf16.msrb.mxu3 %v4031_v29  ;;  %v4460_v47 = vld [vmem:[#allocation18 + $0xa4] sm:$0xf]  ;;  %v1489_v29 = vperm.slane %v5023_v28, 1 }
 0x2f6   :  { %v4015_v53 = vor.u32 %v4460_v47, %v4012_v50  ;;  %v4122_v50 = vld [vmem:[#allocation18 + $0x180] sm:$0xf] }
 0x2f7   :  { %v4123_v54 = vor.u32 %v4489_v51, %v4122_v50 }
 0x2f9   :  { %2798 = vmatpush.bf16.msrb.mxu2 %v3959_v59  ;;  %2811 = vmatpush.bf16.msrb.mxu3 %v4023_v2  ;;  %v4499_v59 = vld [vmem:[#allocation18 + $0x1d4] sm:$0xf0] }
 0x2fa   :  { %v4163_v31 = vor.u32 %v4499_v59, %v4162_v58  ;;  %v4491_v2 = vld [vmem:[#allocation18 + $0x194] sm:$0xf0]  ;;  %v4502_v58 = vld [vmem:[#allocation18 + $0x1f4] sm:$0xf] }
 0x2fb   :  { %v4131_v42 = vor.u32 %v4491_v2, %v4130_v0  ;;  %v4183_v62 = vor.u32 %v4502_v58, %v4180_v61  ;;  %v1491_v0 = vperm.slane %v5023_v28, 3 }
 0x2fc   :  { %2783 = vmatpush.bf16.msrb.mxu1 %v4163_v31 }
 0x2fd   :  { %2799 = vmatpush.bf16.msrb.mxu2 %v3951_v4  ;;  %2812 = vmatpush.bf16.msrb.mxu3 %v4015_v53  ;;  %v4103_v4 = vor.u32 %v4482_v63, %v4100_v3 }
 0x2ff   :  { %v5016_v49 = vpop.f32.mrf.mxu0  ;;  %v5018_v8 = vpop.f32.mrf.mxu1  ;;  %2822 = vmatpush.bf16.msra.mxu0 %v4103_v4  ;;  %v1490_v4 = vperm.slane %v5023_v28, 2 }
 0x300   :  { %2784 = vmatpush.bf16.msrb.mxu1 %v4155_v10 }
 0x301   :  { %2800 = vmatpush.bf16.msrb.mxu2 %v3943_v13  ;;  %2813 = vmatpush.bf16.msrb.mxu3 %v4007_v55  ;;  %v4480_v13 = vld [vmem:[#allocation18 + $0x144] sm:$0xf]  ;;  %v4172_v55 = vld [vmem:[#allocation18 + $0x1e8] sm:$0xf0] }
 0x304   :  { %2785 = vmatpush.bf16.msrb.mxu1 %v4147_v23  ;;  %v4492_v23 = vld [vmem:[#allocation18 + $0x1a4] sm:$0xf] }
 0x305   :  { %2801 = vmatpush.bf16.msrb.mxu2 %v3935_v24  ;;  %2814 = vmatpush.bf16.msrb.mxu3 %v3999_v15  ;;  %v4478_v24 = vld [vmem:[#allocation18 + $0x134] sm:$0xf] }
 0x306   :  { %v4087_v17 = vor.u32 %v4478_v24, %v4084_v27  ;;  %v4140_v24 = vld [vmem:[#allocation18 + $0x1a8] sm:$0xf0] }
 0x307   :  { %v2173_v33 = vpop.f32.mrf.mxu0  ;;  %v2186_v25 = vpop.f32.mrf.mxu1 }
 0x308   :  { %2786 = vmatpush.bf16.msrb.mxu1 %v4139_v34  ;;  %v4488_v34 = vld [vmem:[#allocation18 + $0x184] sm:$0xf] }
 0x30b   :  { %v2145_v44 = vpop.f32.mrf.mxu2  ;;  %v2158_v45 = vpop.f32.mrf.mxu3 }
 0x30c   :  { %v2146_v52 = vadd.f32 %v2145_v44, %v1488_v38  ;;  %v4079_v38 = vor.u32 %v4476_v35, %v4076_v36  ;;  %2787 = vmatpush.bf16.msrb.mxu1 %v4131_v42  ;;  %v4124_v35 = vld [vmem:[#allocation18 + $0x188] sm:$0xf0] }
 0x30d   :  { %v4127_v36 = vor.u32 %v4488_v34, %v4124_v35 }
 0x30e   :  { %v2159_v57 = vadd.f32 %v2158_v45, %v2146_v52  ;;  %v4071_v45 = vor.u32 %v4474_v39, %v4068_v40 }
 0x30f   :  { %v5026_v18 = vpop.f32.mrf.mxu0  ;;  %v5028_v60 = vpop.f32.mrf.mxu1 }
 0x310   :  { %v2172_v1 = vadd.f32 %v5016_v49, %v2159_v57  ;;  %v4095_v49 = vor.u32 %v4480_v13, %v4092_v16  ;;  %v4060_v57 = vld [vmem:[#allocation18 + $0x108] sm:$0xf0]  ;;  %2788 = vmatpush.bf16.msrb.mxu1 %v4123_v54 }
 0x311   :  { %v4063_v31 = vor.u32 %v4472_v56, %v4060_v57  ;;  %v4156_v13 = vld [vmem:[#allocation18 + $0x1c8] sm:$0xf0] }
 0x312   :  { %v2185_v5 = vadd.f32 %v5018_v8, %v2172_v1  ;;  %2823 = vmatpush.bf16.msra.mxu0 %v4095_v49  ;;  %v4494_v49 = vld [vmem:[#allocation18 + $0x1b4] sm:$0xf] }
 0x313   :  { %v2147_v7 = vpop.f32.mrf.mxu2  ;;  %v2160_v9 = vpop.f32.mrf.mxu3 }
 0x314   :  { %v2344_v14 = vmax.f32 %v2185_v5, 0.0  ;;  %2833 = vmatpush.bf16.msra.mxu1 %v4183_v62  ;;  %v4498_v5 = vld [vmem:[#allocation18 + $0x1d4] sm:$0xf]  ;;  %v2416_v62 = vld [vmem:[%s5059_s12] sm:$0x3]  ;;  %s4826_s12 = smov [#allocation20]  }
 0x315   :  { %v4167_v9 = vor.u32 %v4498_v5, %v4164_v6 }
 0x316   :  { %v2348_v19 = vpack.c.bf16 %v2344_v14, %v2344_v14  ;;  %2824 = vmatpush.bf16.msra.mxu0 %v4087_v17  ;;  %v4159_v14 = vor.u32 %v4496_v12, %v4156_v13  ;;  %v4490_v17 = vld [vmem:[#allocation18 + $0x194] sm:$0xf] }
 0x317   :  { %v2225_v8 = vpop.f32.mrf.mxu0  ;;  %v2238_v22 = vpop.f32.mrf.mxu1  ;;  %v4135_v32 = vor.u32 %v4490_v17, %v4132_v30 }
 0x318   :  { %2750 = vmatmul.bf16.vlgmr.msra.gmra.mxu2 %v2348_v19 }
 0x31a   :  { %2825 = vmatpush.bf16.msra.mxu0 %v4079_v38 }
 0x31b   :  { %v2197_v33 = vpop.f32.mrf.mxu2  ;;  %v2210_v25 = vpop.f32.mrf.mxu3 }
 0x31c   :  { %v2198_v37 = vadd.f32 %v2197_v33, %v1489_v29  ;;  %v4143_v29 = vor.u32 %v4492_v23, %v4140_v24  ;;  %v2864_v24 = vlaneseq }
 0x31e   :  { %v2211_v41 = vadd.f32 %v2210_v25, %v2198_v37  ;;  %2826 = vmatpush.bf16.msra.mxu0 %v4071_v45 }
 0x31f   :  { %v2275_v43 = vpop.f32.mrf.mxu0  ;;  %v2288_v44 = vpop.f32.mrf.mxu1 }
 0x320   :  { %v2224_v46 = vadd.f32 %v5026_v18, %v2211_v41 }
 0x322   :  { %v2237_v47 = vadd.f32 %v5028_v60, %v2224_v46  ;;  %2827 = vmatpush.bf16.msra.mxu0 %v4063_v31  ;;  %v4500_v60 = vld [vmem:[#allocation18 + $0x1e4] sm:$0xf] }
 0x323   :  { %v2199_v52 = vpop.f32.mrf.mxu2  ;;  %v2212_v53 = vpop.f32.mrf.mxu3  ;;  %v4175_v3 = vor.u32 %v4500_v60, %v4172_v55  ;;  %v2419_v60 = vperm.slane %v2416_v62, 1 }
 0x324   :  { %v2345_v59 = vmax.f32 %v2237_v47, 0.0 }
 0x325   :  { %2834 = vmatpush.bf16.msra.mxu1 %v4175_v3 }
 0x326   :  { %v2349_v63 = vpack.c.bf16 %v2345_v59, %v2345_v59 }
 0x327   :  { %v2277_v1 = vpop.f32.mrf.mxu0  ;;  %v2290_v18 = vpop.f32.mrf.mxu1 }
 0x328   :  { %2763 = vmatmul.bf16.vlgmr.msra.gmra.mxu3 %v2349_v63  ;;  %2802 = vmatmul.bf16.vlgmr.msrb.gmra.mxu2 %v2348_v19  ;;  %v4148_v19 = vld [vmem:[#allocation18 + $0x1b8] sm:$0xf0]  ;;  %v2418_v1 = vperm.slane %v2416_v62, 0 }
 0x329   :  { %2835 = vmatpush.bf16.msra.mxu1 %v4167_v9  ;;  %v4151_v8 = vor.u32 %v4494_v49, %v4148_v19 }
 0x32b   :  { %v2249_v48 = vpop.f32.mrf.mxu2  ;;  %v2262_v7 = vpop.f32.mrf.mxu3 }
 0x32c   :  { %v2250_v10 = vadd.f32 %v2249_v48, %v1490_v4 }
 0x32d   :  { %2836 = vmatpush.bf16.msra.mxu1 %v4159_v14 }
 0x32e   :  { %v2263_v11 = vadd.f32 %v2262_v7, %v2250_v10  ;;  %v2848_v7 = vld [vmem:[%s5060_s13] sm:$0x3]  ;;  %s2879_s13 = sshll.u32 %s4826_s12, 4  ;;  %s2880_s13 = int_to_ptr.vmem [resolvable:$true] %s2879_s13 }
 0x32f   :  { %v2850_v13 = vperm.slane %v2848_v7, 0  ;;  %v2851_v14 = vperm.slane %v2848_v7, 1 }
 0x330   :  { %v2276_v15 = vadd.f32 %v2275_v43, %v2263_v11 }
 0x331   :  { %2837 = vmatpush.bf16.msra.mxu1 %v4151_v8  ;;  %v4526_v8 = vld [vmem:[#allocation2] ss:$0 sm:$0xff] }
 0x332   :  { %v2289_v16 = vadd.f32 %v2288_v44, %v2276_v15 }
 0x333   :  { %v2251_v20 = vpop.f32.mrf.mxu2  ;;  %v2264_v21 = vpop.f32.mrf.mxu3 }
 0x334   :  { %v2346_v22 = vmax.f32 %v2289_v16, 0.0  ;;  %v4825_v21 = vmov 0  }
 0x335   :  { %2838 = vmatpush.bf16.msra.mxu1 %v4143_v29  ;;  %4524 = vset.pattern.permute.xlu0 %v4825_v21 }
 0x336   :  { %v2350_v27 = vpack.c.bf16 %v2346_v22, %v2346_v22 }
 0x338   :  { %2815 = vmatmul.bf16.vlgmr.msrb.gmra.mxu3 %v2349_v63  ;;  %2776 = vmatmul.bf16.vlgmr.msrb.gmra.mxu0 %v2350_v27 }
 0x339   :  { %2839 = vmatpush.bf16.msra.mxu1 %v4135_v32 }
 0x33d   :  { %2840 = vmatpush.bf16.msra.mxu1 %v4127_v36 }
 0x33f   :  { %v2327_v33 = vpop.f32.mrf.mxu0  ;;  %v2340_v25 = vpop.f32.mrf.mxu1 }
 0x347   :  { %v2329_v37 = vpop.f32.mrf.mxu0  ;;  %v2342_v38 = vpop.f32.mrf.mxu1 }
 0x348   :  { %2828 = vmatmul.bf16.vlgmr.msra.gmra.mxu0 %v2350_v27  ;;  %v2865_v27 = vand.u32 127, %v2864_v24 }
 0x34a   :  { %vm2866_vm1 = vcmp.eq.s32.totalorder %v2865_v27, 8 }
 0x34b   :  { %v2301_v2 = vpop.f32.mrf.mxu2  ;;  %v2314_v39 = vpop.f32.mrf.mxu3 }
 0x34c   :  { %v2302_v40 = vadd.f32 %v2301_v2, %v1491_v0 }
 0x34e   :  { %v2315_v41 = vadd.f32 %v2314_v39, %v2302_v40 }
 0x350   :  { %v2328_v42 = vadd.f32 %v2327_v33, %v2315_v41 }
 0x352   :  { %v2341_v43 = vadd.f32 %v2340_v25, %v2328_v42 }
 0x353   :  { %v2303_v44 = vpop.f32.mrf.mxu2  ;;  %v2316_v45 = vpop.f32.mrf.mxu3 }
 0x354   :  { %v2347_v46 = vmax.f32 %v2341_v43, 0.0 }
 0x356   :  { %v2351_v47 = vpack.c.bf16 %v2347_v46, %v2347_v46 }
 0x358   :  { %2789 = vmatmul.bf16.vlgmr.msrb.gmra.mxu1 %v2351_v47 }
 0x368   :  { %2841 = vmatmul.bf16.vlgmr.msra.gmra.mxu1 %v2351_v47 }
 0x39b   :  { %v2751_v50 = vpop.f32.mrf.mxu2 }
 0x39c   :  { %v2752_v18 = vadd.f32 %v2751_v50, %v2418_v1 }
 0x3a3   :  { %v2753_v51 = vpop.f32.mrf.mxu2 }
 0x3ab   :  { %v2764_v52 = vpop.f32.mrf.mxu3  ;;  %v2803_v53 = vpop.f32.mrf.mxu2 }
 0x3ac   :  { %v2765_v3 = vadd.f32 %v2764_v52, %v2752_v18  ;;  %v2804_v4 = vadd.f32 %v2803_v53, %v2419_v60 }
 0x3b3   :  { %v2766_v54 = vpop.f32.mrf.mxu3  ;;  %v2805_v56 = vpop.f32.mrf.mxu2 }
 0x3b5   :  { %v2777_v28 = vpop.f32.mrf.mxu0 }
 0x3b6   :  { %v2778_v5 = vadd.f32 %v2777_v28, %v2765_v3 }
 0x3bb   :  { %v2816_v57 = vpop.f32.mrf.mxu3 }
 0x3bc   :  { %v2817_v6 = vadd.f32 %v2816_v57, %v2804_v4 }
 0x3bd   :  { %v2779_v58 = vpop.f32.mrf.mxu0 }
 0x3c3   :  { %v2818_v59 = vpop.f32.mrf.mxu3 }
 0x3c5   :  { %v2829_v31 = vpop.f32.mrf.mxu0 }
 0x3c6   :  { %v2830_v9 = vadd.f32 %v2829_v31, %v2817_v6 }
 0x3cd   :  { %v2831_v61 = vpop.f32.mrf.mxu0 }
 0x3d5   :  { %v2790_v63 = vpop.f32.mrf.mxu1 }
 0x3d6   :  { %v2791_v48 = vadd.f32 %v2790_v63, %v2778_v5 }
 0x3d8   :  { %v2846_v11 = vmax.f32 %v2791_v48, 0.0 }
 0x3da   :  { %v2854_v16 = vmul.f32 %v2850_v13, %v2846_v11 }
 0x3dd   :  { %v2792_v55 = vpop.f32.mrf.mxu1 }
 0x3e5   :  { %v2842_v10 = vpop.f32.mrf.mxu1 }
 0x3e6   :  { %v2843_v12 = vadd.f32 %v2842_v10, %v2830_v9 }
 0x3e8   :  { %v2847_v15 = vmax.f32 %v2843_v12, 0.0 }
 0x3ea   :  { %v2855_v49 = vmul.f32 %v2851_v14, %v2847_v15 }
 0x3ec   :  { %v2856_v19 = vadd.f32 %v2855_v49, %v2854_v16 }
 0x3ed   :  { %v2844_v20 = vpop.f32.mrf.mxu1 }
 0x3ee   :  { %2857 = vadd.xlane.f32.xlu0 %v2856_v19 }
 0x461   :  { %v2858_v22 = vpop.xlane.xlu0 %2857 }
 0x462   :  { %v2863_v23 = vadd.f32 %v4526_v8, %v2858_v22 }
 0x464   :  { %2869 = vperm.xlu0 %4524, %v2863_v23  }
 0x4d6   :  { %v2870_v29 = vpop.permute.xlu0 %2869 }
 0x4d7   :  { %v2872_v17 = vsel %vm2866_vm1, %v2870_v29, %v4981_v26 }
 0x4d8   :  { %2873 = vst [vmem:[#allocation20] sm:$0xff] %v2872_v17 }
 0x4d9   :  { %2884 = dma.vmem_to_hbm [thread:$0]  %s2880_s13, 128, %s2882_s23, [#allocation5]  }
 0x4da   :  { %4805 = dma.done.wait [#allocation5], 128  }
 0x4db   :  { %4806 = vsyncadd [#allocation5], 4294967168 }
 0x4dc   :  { %2889 = vsyncpa [#allocation4], 1 }
 0x4dd   :  { %2890 = vsyncpa [#allocation7], 1 }
 0x4de   :  { %2891 = vsyncpa [#allocation10], 1 }
 0x4df   :  { %2892 = vsyncpa [#allocation13], 1 }
 0x4e0   :  { %2893 = vsyncpa [#allocation16], 1 }
 0x4e1   :  { %2894 = vsyncpa [#allocation19], 1 }
 0x4e2   :  { %2895 = vsyncpa [#allocation5], 1 }

</bundles_post_ra>
